<compile_context>
chip_gen: v7x
topology: tpu7x:2x2x1
jax: 0.10.0
libtpu: 0.0.40
codegen_flags: <defaults>
</compile_context>

<pallas_src>
import math

import jax
import jax.numpy as jnp
from jax.experimental import pallas as pl
from jax.experimental.pallas import tpu as pltpu


LN2 = math.log(2.0)
LANE = 128


def _ssp(x):
    # ShiftedSoftplus: softplus(x) - log(2), numerically stable, f32.
    return jnp.maximum(x, 0.0) + jnp.log1p(jnp.exp(-jnp.abs(x))) - LN2


def _round_up(x, m):
    return ((x + m - 1) // m) * m


def _pad2(a, rows, cols):
    out = jnp.zeros((rows, cols), a.dtype)
    return out.at[: a.shape[0], : a.shape[1]].set(a)


# ----------------------------------------------------------------------------
# Kernel 1: Gaussian RBF expansion   rbf[e, k] = exp(-gamma * (d[e] - mu[k])^2)
# ----------------------------------------------------------------------------
def _rbf_kernel(d_ref, mu_ref, gamma_ref, o_ref):
    diff = d_ref[...] - mu_ref[...]              # (tile_e, 1) - (1, GP)
    o_ref[...] = jnp.exp(-gamma_ref[...] * diff * diff).astype(o_ref.dtype)


def rbf_expand(d_pad, centers, gamma, tile_e):
    EP = d_pad.shape[0]
    GP = centers.shape[1]
    return pl.pallas_call(
        _rbf_kernel,
        out_shape=jax.ShapeDtypeStruct((EP, GP), jnp.bfloat16),
        grid_spec=pltpu.PrefetchScalarGridSpec(
            num_scalar_prefetch=0,
            grid=(EP // tile_e,),
            in_specs=[
                pl.BlockSpec((tile_e, 1), lambda i: (i, 0)),
                pl.BlockSpec((1, GP), lambda i: (0, 0)),
                pl.BlockSpec((1, 1), lambda i: (0, 0)),
            ],
            out_specs=pl.BlockSpec((tile_e, GP), lambda i: (i, 0)),
        ),
        compiler_params=pltpu.CompilerParams(dimension_semantics=("parallel",)),
    )(d_pad, centers, gamma)


# ----------------------------------------------------------------------------
# Kernel 2 (per conv layer): fused edge path
#   h      = ssp(h_src@W1s + h_dst@W1d + e@W1e + b1)      (EdgeUpdate linear 1)
#   e_new  = h @ W2 + b2                                  (EdgeUpdate linear 2)
#   he     = ssp(e_new @ pe1_w + pe1_b) @ pe2_w + pe2_b   (EUCFConv.project_edge)
# ----------------------------------------------------------------------------
def _edge_update_kernel(hs_ref, hd_ref, e_ref,
                        w1s_ref, w1d_ref, w1e_ref, b1_ref,
                        w2_ref, b2_ref,
                        pe1w_ref, pe1b_ref, pe2w_ref, pe2b_ref,
                        eout_ref, he_ref):
    f32 = jnp.float32
    h = (jnp.dot(hs_ref[...], w1s_ref[...], preferred_element_type=f32)
         + jnp.dot(hd_ref[...], w1d_ref[...], preferred_element_type=f32)
         + jnp.dot(e_ref[...], w1e_ref[...], preferred_element_type=f32)
         + b1_ref[...])
    h = _ssp(h)
    e_new = jnp.dot(h.astype(jnp.bfloat16), w2_ref[...],
                    preferred_element_type=f32) + b2_ref[...]
    eout_ref[...] = e_new.astype(eout_ref.dtype)

    he = _ssp(jnp.dot(e_new.astype(jnp.bfloat16), pe1w_ref[...],
                      preferred_element_type=f32) + pe1b_ref[...])
    he = jnp.dot(he.astype(jnp.bfloat16), pe2w_ref[...],
                 preferred_element_type=f32) + pe2b_ref[...]
    he_ref[...] = he.astype(he_ref.dtype)


def edge_update(h_src, h_dst, e_in, L, tile_e):
    EP, DP = h_src.shape
    GP = e_in.shape[1]
    D2P = L["eu_w1_src"].shape[1]
    row = lambda i: (i, 0)
    rep = lambda i: (0, 0)
    return pl.pallas_call(
        _edge_update_kernel,
        out_shape=(jax.ShapeDtypeStruct((EP, GP), jnp.bfloat16),
                   jax.ShapeDtypeStruct((EP, DP), jnp.bfloat16)),
        grid_spec=pltpu.PrefetchScalarGridSpec(
            num_scalar_prefetch=0,
            grid=(EP // tile_e,),
            in_specs=[
                pl.BlockSpec((tile_e, DP), row),
                pl.BlockSpec((tile_e, DP), row),
                pl.BlockSpec((tile_e, GP), row),
                pl.BlockSpec((DP, D2P), rep),
                pl.BlockSpec((DP, D2P), rep),
                pl.BlockSpec((GP, D2P), rep),
                pl.BlockSpec((1, D2P), rep),
                pl.BlockSpec((D2P, GP), rep),
                pl.BlockSpec((1, GP), rep),
                pl.BlockSpec((GP, DP), rep),
                pl.BlockSpec((1, DP), rep),
                pl.BlockSpec((DP, DP), rep),
                pl.BlockSpec((1, DP), rep),
            ],
            out_specs=(pl.BlockSpec((tile_e, GP), row),
                       pl.BlockSpec((tile_e, DP), row)),
        ),
        compiler_params=pltpu.CompilerParams(dimension_semantics=("parallel",)),
    )(h_src, h_dst, e_in,
      L["eu_w1_src"], L["eu_w1_dst"], L["eu_w1_rbf"], L["eu_b1"],
      L["eu_w2"], L["eu_b2"],
      L["pe1_w"], L["pe1_b"], L["pe2_w"], L["pe2_b"])


# ----------------------------------------------------------------------------
# Kernel 3 (per conv layer): K-tiled aggregation (sum of incoming edge messages
# via one-hot-dst matmul, f32 VMEM accumulator over edge tiles) fused with
# project_node2 (Linear->ssp->Linear) and the residual node update.
# ----------------------------------------------------------------------------
def _agg_node_kernel(a_ref, he_ref, node_ref, w1_ref, b1_ref, w2_ref, b2_ref,
                     o_ref, acc_ref):
    k = pl.program_id(1)

    @pl.when(k == 0)
    def _():
        acc_ref[...] = jnp.zeros_like(acc_ref)

    acc_ref[...] += jnp.dot(a_ref[...], he_ref[...],
                            preferred_element_type=jnp.float32)

    @pl.when(k == pl.num_programs(1) - 1)
    def _():
        h = _ssp(jnp.dot(acc_ref[...].astype(jnp.bfloat16), w1_ref[...],
                         preferred_element_type=jnp.float32) + b1_ref[...])
        new_node = jnp.dot(h.astype(jnp.bfloat16), w2_ref[...],
                           preferred_element_type=jnp.float32) + b2_ref[...]
        o_ref[...] = node_ref[...] + new_node


def agg_node_update(agg_mat, he, node, L, tile_n, tile_e):
    NP, EP = agg_mat.shape
    DP = node.shape[1]
    rep = lambda i, k: (0, 0)
    return pl.pallas_call(
        _agg_node_kernel,
        out_shape=jax.ShapeDtypeStruct((NP, DP), jnp.float32),
        grid_spec=pltpu.PrefetchScalarGridSpec(
            num_scalar_prefetch=0,
            grid=(NP // tile_n, EP // tile_e),
            in_specs=[
                pl.BlockSpec((tile_n, tile_e), lambda i, k: (i, k)),
                pl.BlockSpec((tile_e, DP), lambda i, k: (k, 0)),
                pl.BlockSpec((tile_n, DP), lambda i, k: (i, 0)),
                pl.BlockSpec((DP, DP), rep),
                pl.BlockSpec((1, DP), rep),
                pl.BlockSpec((DP, DP), rep),
                pl.BlockSpec((1, DP), rep),
            ],
            out_specs=pl.BlockSpec((tile_n, DP), lambda i, k: (i, 0)),
            scratch_shapes=[pltpu.VMEM((tile_n, DP), jnp.float32)],
        ),
        compiler_params=pltpu.CompilerParams(
            dimension_semantics=("parallel", "arbitrary")),
    )(agg_mat, he, node, L["pn2_w1"], L["pn2_b1"], L["pn2_w2"], L["pn2_b2"])


# ----------------------------------------------------------------------------
# Kernel 4: fused readout  atom_dense1 -> ssp -> atom_dense2 -> masked avg pool
# ----------------------------------------------------------------------------
def _readout_kernel(node_ref, w1_ref, b1_ref, w2_ref, b2_ref, pool_ref, o_ref):
    f32 = jnp.float32
    atom = _ssp(jnp.dot(node_ref[...].astype(jnp.bfloat16), w1_ref[...],
                        preferred_element_type=f32) + b1_ref[...])
    res = jnp.dot(atom.astype(jnp.bfloat16), w2_ref[...],
                  preferred_element_type=f32) + b2_ref[...]
    # Masked average pool: pool is a (NP, 1) column of 1/N for real nodes, 0 for pad.
    o_ref[...] = jnp.sum(res * pool_ref[...], axis=0, keepdims=True)


def readout(node, params, pool):
    NP, DP = node.shape
    HP = params["ad1_w"].shape[1]
    OP = params["ad2_w"].shape[1]
    rep = lambda i: (0, 0)
    return pl.pallas_call(
        _readout_kernel,
        out_shape=jax.ShapeDtypeStruct((1, OP), jnp.float32),
        grid_spec=pltpu.PrefetchScalarGridSpec(
            num_scalar_prefetch=0,
            grid=(1,),
            in_specs=[
                pl.BlockSpec((NP, DP), rep),
                pl.BlockSpec((DP, HP), rep),
                pl.BlockSpec((1, HP), rep),
                pl.BlockSpec((HP, OP), rep),
                pl.BlockSpec((1, OP), rep),
                pl.BlockSpec((NP, 1), rep),
            ],
            out_specs=pl.BlockSpec((1, OP), rep),
        ),
    )(node, params["ad1_w"], params["ad1_b"], params["ad2_w"],
      params["ad2_b"], pool)


# ----------------------------------------------------------------------------
# Parameter construction (xavier_uniform like reset_parameters, zero biases),
# pre-padded to lane-dense (multiple-of-128) widths, weights in bf16.
# ----------------------------------------------------------------------------
def _xavier(key, fan_in, fan_out):
    limit = math.sqrt(6.0 / (fan_in + fan_out))
    return jax.random.uniform(key, (fan_in, fan_out), jnp.float32,
                              minval=-limit, maxval=limit)


def make_params(key, *, num_atom_types, dim, rbf_dim, n_conv, output_dim,
                cutoff):
    DP = _round_up(dim, LANE)
    GP = _round_up(rbf_dim, LANE)
    D2P = _round_up(2 * dim, LANE)
    HP = _round_up(max(dim // 2, 1), LANE)
    OP = _round_up(output_dim, LANE)

    keys = iter(jax.random.split(key, 4 + 8 * n_conv))
    params = {}

    # AtomEmbedding table (embedding class not provided -> plain lookup table).
    embed = 0.1 * jax.random.normal(next(keys), (num_atom_types, dim),
                                    jnp.float32)
    params["embed"] = _pad2(embed, num_atom_types, DP)

    # RBFLayer(0, cutoff, num_gaussians): Gaussian smearing centers.
    centers = jnp.linspace(0.0, cutoff, rbf_dim).astype(jnp.float32)
    delta = cutoff / (rbf_dim - 1)
    params["rbf_centers"] = _pad2(centers.reshape(1, rbf_dim), 1, GP)
    params["rbf_gamma"] = jnp.array([[0.5 / (delta * delta)]], jnp.float32)

    convs = []
    for _ in range(n_conv):
        # EdgeUpdate.project_edge[0]: Linear(2*dim+rbf, 2*dim); split the
        # K dimension into (src, dst, rbf) slices so no concat is needed.
        w1 = _xavier(next(keys), 2 * dim + rbf_dim, 2 * dim)
        layer = {
            "eu_w1_src": _pad2(w1[:dim], DP, D2P).astype(jnp.bfloat16),
            "eu_w1_dst": _pad2(w1[dim:2 * dim], DP, D2P).astype(jnp.bfloat16),
            "eu_w1_rbf": _pad2(w1[2 * dim:], GP, D2P).astype(jnp.bfloat16),
            "eu_b1": jnp.zeros((1, D2P), jnp.float32),
            "eu_w2": _pad2(_xavier(next(keys), 2 * dim, rbf_dim),
                           D2P, GP).astype(jnp.bfloat16),
            "eu_b2": jnp.zeros((1, GP), jnp.float32),
            # EUCFConv.project_edge: Linear(rbf, dim) -> ssp -> Linear(dim, dim)
            "pe1_w": _pad2(_xavier(next(keys), rbf_dim, dim),
                           GP, DP).astype(jnp.bfloat16),
            "pe1_b": jnp.zeros((1, DP), jnp.float32),
            "pe2_w": _pad2(_xavier(next(keys), dim, dim),
                           DP, DP).astype(jnp.bfloat16),
            "pe2_b": jnp.zeros((1, DP), jnp.float32),
            # EUCFConv.project_node2: Linear(dim, dim) -> ssp -> Linear(dim, dim)
            "pn2_w1": _pad2(_xavier(next(keys), dim, dim),
                            DP, DP).astype(jnp.bfloat16),
            "pn2_b1": jnp.zeros((1, DP), jnp.float32),
            "pn2_w2": _pad2(_xavier(next(keys), dim, dim),
                            DP, DP).astype(jnp.bfloat16),
            "pn2_b2": jnp.zeros((1, DP), jnp.float32),
            # NOTE: EUCFConv.project_node1 is dead in the reference forward
            # (its output 'hv' is never consumed by copy_edge/sum) -> dropped.
        }
        convs.append(layer)
    params["conv"] = convs

    params["ad1_w"] = _pad2(_xavier(next(keys), dim, dim // 2),
                            DP, HP).astype(jnp.bfloat16)
    params["ad1_b"] = jnp.zeros((1, HP), jnp.float32)
    params["ad2_w"] = _pad2(_xavier(next(keys), dim // 2, output_dim),
                            HP, OP).astype(jnp.bfloat16)
    params["ad2_b"] = jnp.zeros((1, OP), jnp.float32)
    return params


# ----------------------------------------------------------------------------
# Full NMPEUModel forward (aggregation_mode='avg', norm=False, single graph)
# ----------------------------------------------------------------------------
def nmpeu_forward(params, atom_types, src, dst, distance, *, output_dim):
    N = atom_types.shape[0]
    E = distance.shape[0]
    GP = params["rbf_centers"].shape[1]
    del GP  # widths come from the padded params

    # Row tiling: <=256 rows per block (multiple of 8/16), pad rows to a
    # multiple of the tile so every block is either full or lane/sublane dense.
    tile_n = min(256, _round_up(N, 8))
    NP = _round_up(N, tile_n)
    tile_e = min(256, _round_up(E, 8))
    EP = _round_up(E, tile_e)

    # --- graph glue (padding, embedding lookup, gathers) in plain JAX ---
    at_pad = jnp.zeros((NP,), atom_types.dtype).at[:N].set(atom_types)
    node = params["embed"][at_pad]                                # [NP, DP] f32
    node = node * (jnp.arange(NP) < N)[:, None].astype(node.dtype)

    d_pad = jnp.zeros((EP, 1), jnp.float32).at[:E, 0].set(
        distance.astype(jnp.float32))
    src_pad = jnp.zeros((EP,), jnp.int32).at[:E].set(src.astype(jnp.int32))
    dst_gather = jnp.zeros((EP,), jnp.int32).at[:E].set(dst.astype(jnp.int32))
    dst_agg = jnp.full((EP,), -1, jnp.int32).at[:E].set(dst.astype(jnp.int32))

    # RBF layer (Pallas kernel); gamma passed as a kernel input, not a closure.
    edge = rbf_expand(d_pad, params["rbf_centers"], params["rbf_gamma"],
                      tile_e)                                     # [EP, GP] bf16

    # Dense one-hot destination matrix in bf16: A[v, e] = 1 iff dst[e] == v.
    # update_all(copy_edge, sum) == A @ edge_messages (K-tiled on the MXU).
    agg_mat = (dst_agg[None, :] == jnp.arange(NP)[:, None]).astype(jnp.bfloat16)
    # TODO(synk): for very large graphs replace the dense [N, E] one-hot with a
    # sorted-by-dst segment-sum kernel; the K-tiled matmul bounds VMEM but the
    # HBM footprint of agg_mat is still O(N*E).

    for L in params["conv"]:
        # ---- EdgeUpdate + EUCFConv.project_edge (one fused kernel) ----
        h_src = node[src_pad].astype(jnp.bfloat16)                # [EP, DP]
        h_dst = node[dst_gather].astype(jnp.bfloat16)             # [EP, DP]
        edge, he = edge_update(h_src, h_dst, edge, L, tile_e)

        # ---- aggregation + project_node2 + residual (one fused kernel) ----
        node = agg_node_update(agg_mat, he, node, L, tile_n, tile_e)

    # ---- readout: atom_dense1 -> ssp -> atom_dense2 -> avg pool (one kernel) ----
    pool = jnp.zeros((NP, 1), jnp.float32).at[:N, 0].set(1.0 / N)
    out = readout(node, params, pool)                             # [1, OP]
    return out[:, :output_dim]


if __name__ == "__main__":
    # Small deterministic example graph.
    NUM_NODES = 8
    NUM_EDGES = 16
    DIM = 32
    RBF_DIM = 32
    N_CONV = 3
    OUTPUT_DIM = 1
    CUTOFF = 5.0
    NUM_ATOM_TYPES = 10

    key = jax.random.PRNGKey(0)
    k_par, k_type, k_src, k_dst, k_dist = jax.random.split(key, 5)

    params = make_params(k_par, num_atom_types=NUM_ATOM_TYPES, dim=DIM,
                         rbf_dim=RBF_DIM, n_conv=N_CONV,
                         output_dim=OUTPUT_DIM, cutoff=CUTOFF)

    atom_types = jax.random.randint(k_type, (NUM_NODES,), 0, NUM_ATOM_TYPES)
    src = jax.random.randint(k_src, (NUM_EDGES,), 0, NUM_NODES)
    dst = jax.random.randint(k_dst, (NUM_EDGES,), 0, NUM_NODES)
    distance = jax.random.uniform(k_dist, (NUM_EDGES,), jnp.float32,
                                  minval=0.5, maxval=CUTOFF)

    fwd = jax.jit(nmpeu_forward, static_argnames=("output_dim",))
    out = fwd(params, atom_types, src, dst, distance, output_dim=OUTPUT_DIM)
    out = jax.block_until_ready(out)
    assert out.shape == (1, OUTPUT_DIM)
    assert bool(jnp.all(jnp.isfinite(out)))
    print("KERNEL_OK")
</pallas_src>

<mosaic_0001>
module attributes {stable_mosaic.version = 11 : i64} {
  func.func @_rbf_kernel(%arg0: i32, %arg1: memref<16x1xf32, #tpu.memory_space<vmem>>, %arg2: memref<1x128xf32, #tpu.memory_space<vmem>>, %arg3: memref<1x1xf32, #tpu.memory_space<vmem>>, %arg4: memref<16x128xbf16, #tpu.memory_space<vmem>>) attributes {dimension_semantics = [#tpu.dimension_semantics<parallel>], iteration_bounds = array<i64: 1>, scalar_prefetch = 0 : i64, scratch_operands = 0 : i64, tpu.core_type = #tpu.core_type<tc>, window_params = [{transform_indices = @transform_0, window_bounds = array<i64: 16, 1>}, {pipeline_mode = #tpu.pipeline_mode<synchronous>, transform_indices = @transform_1, window_bounds = array<i64: 1, 128>}, {pipeline_mode = #tpu.pipeline_mode<synchronous>, transform_indices = @transform_2, window_bounds = array<i64: 1, 1>}, {transform_indices = @transform_3, window_bounds = array<i64: 16, 128>}]} {
    %c0 = arith.constant 0 : index
    %c0_0 = arith.constant 0 : index
    %0 = vector.load %arg1[%c0, %c0_0] : memref<16x1xf32, #tpu.memory_space<vmem>>, vector<16x1xf32>
    %c0_1 = arith.constant 0 : index
    %c0_2 = arith.constant 0 : index
    %1 = vector.load %arg2[%c0_1, %c0_2] : memref<1x128xf32, #tpu.memory_space<vmem>>, vector<1x128xf32>
    %2 = vector.broadcast %0 : vector<16x1xf32> to vector<16x128xf32>
    %3 = vector.broadcast %1 : vector<1x128xf32> to vector<16x128xf32>
    %4 = arith.subf %2, %3 : vector<16x128xf32>
    %c0_3 = arith.constant 0 : index
    %c0_4 = arith.constant 0 : index
    %5 = vector.load %arg3[%c0_3, %c0_4] : memref<1x1xf32, #tpu.memory_space<vmem>>, vector<1x1xf32>
    %cst = arith.constant 0.000000e+00 : f32
    %6 = vector.broadcast %cst : f32 to vector<1x1xf32>
    %7 = arith.subf %6, %5 : vector<1x1xf32>
    %8 = vector.broadcast %7 : vector<1x1xf32> to vector<16x128xf32>
    %9 = arith.mulf %8, %4 : vector<16x128xf32>
    %10 = arith.mulf %9, %4 : vector<16x128xf32>
    %11 = math.exp %10 : vector<16x128xf32>
    %12 = arith.truncf %11 : vector<16x128xf32> to vector<16x128xbf16>
    %c0_5 = arith.constant 0 : index
    %c0_6 = arith.constant 0 : index
    %13 = vector.load %arg4[%c0_5, %c0_6] : memref<16x128xbf16, #tpu.memory_space<vmem>>, vector<16x128xbf16>
    tpu.vector_store %arg4[%c0_5, %c0_6], %12 {strides = array<i32>} : memref<16x128xbf16, #tpu.memory_space<vmem>>, vector<16x128xbf16>,
    return
  }
  func.func @transform_0(%arg0: i32) -> (i32, i32) {
    %c0_i32 = arith.constant 0 : i32
    %c0_i32_0 = arith.constant 0 : i32
    return %arg0, %c0_i32 : i32, i32
  }
  func.func @transform_1(%arg0: i32) -> (i32, i32) {
    %c0_i32 = arith.constant 0 : i32
    %c0_i32_0 = arith.constant 0 : i32
    %c0_i32_1 = arith.constant 0 : i32
    return %c0_i32, %c0_i32_0 : i32, i32
  }
  func.func @transform_2(%arg0: i32) -> (i32, i32) {
    %c0_i32 = arith.constant 0 : i32
    %c0_i32_0 = arith.constant 0 : i32
    %c0_i32_1 = arith.constant 0 : i32
    return %c0_i32, %c0_i32_0 : i32, i32
  }
  func.func @transform_3(%arg0: i32) -> (i32, i32) {
    %c0_i32 = arith.constant 0 : i32
    %c0_i32_0 = arith.constant 0 : i32
    return %arg0, %c0_i32 : i32, i32
  }
}

module attributes {stable_mosaic.version = 11 : i64} {
  func.func @_edge_update_kernel(%arg0: i32, %arg1: memref<16x128xbf16, #tpu.memory_space<vmem>>, %arg2: memref<16x128xbf16, #tpu.memory_space<vmem>>, %arg3: memref<16x128xbf16, #tpu.memory_space<vmem>>, %arg4: memref<128x128xbf16, #tpu.memory_space<vmem>>, %arg5: memref<128x128xbf16, #tpu.memory_space<vmem>>, %arg6: memref<128x128xbf16, #tpu.memory_space<vmem>>, %arg7: memref<1x128xf32, #tpu.memory_space<vmem>>, %arg8: memref<128x128xbf16, #tpu.memory_space<vmem>>, %arg9: memref<1x128xf32, #tpu.memory_space<vmem>>, %arg10: memref<128x128xbf16, #tpu.memory_space<vmem>>, %arg11: memref<1x128xf32, #tpu.memory_space<vmem>>, %arg12: memref<128x128xbf16, #tpu.memory_space<vmem>>, %arg13: memref<1x128xf32, #tpu.memory_space<vmem>>, %arg14: memref<16x128xbf16, #tpu.memory_space<vmem>>, %arg15: memref<16x128xbf16, #tpu.memory_space<vmem>>) attributes {dimension_semantics = [#tpu.dimension_semantics<parallel>], iteration_bounds = array<i64: 1>, scalar_prefetch = 0 : i64, scratch_operands = 0 : i64, tpu.core_type = #tpu.core_type<tc>, window_params = [{transform_indices = @transform_0, window_bounds = array<i64: 16, 128>}, {transform_indices = @transform_1, window_bounds = array<i64: 16, 128>}, {transform_indices = @transform_2, window_bounds = array<i64: 16, 128>}, {pipeline_mode = #tpu.pipeline_mode<synchronous>, transform_indices = @transform_3, window_bounds = array<i64: 128, 128>}, {pipeline_mode = #tpu.pipeline_mode<synchronous>, transform_indices = @transform_4, window_bounds = array<i64: 128, 128>}, {pipeline_mode = #tpu.pipeline_mode<synchronous>, transform_indices = @transform_5, window_bounds = array<i64: 128, 128>}, {pipeline_mode = #tpu.pipeline_mode<synchronous>, transform_indices = @transform_6, window_bounds = array<i64: 1, 128>}, {pipeline_mode = #tpu.pipeline_mode<synchronous>, transform_indices = @transform_7, window_bounds = array<i64: 128, 128>}, {pipeline_mode = #tpu.pipeline_mode<synchronous>, transform_indices = @transform_8, window_bounds = array<i64: 1, 128>}, {pipeline_mode = #tpu.pipeline_mode<synchronous>, transform_indices = @transform_9, window_bounds = array<i64: 128, 128>}, {pipeline_mode = #tpu.pipeline_mode<synchronous>, transform_indices = @transform_10, window_bounds = array<i64: 1, 128>}, {pipeline_mode = #tpu.pipeline_mode<synchronous>, transform_indices = @transform_11, window_bounds = array<i64: 128, 128>}, {pipeline_mode = #tpu.pipeline_mode<synchronous>, transform_indices = @transform_12, window_bounds = array<i64: 1, 128>}, {transform_indices = @transform_13, window_bounds = array<i64: 16, 128>}, {transform_indices = @transform_14, window_bounds = array<i64: 16, 128>}]} {
    %c0 = arith.constant 0 : index
    %c0_0 = arith.constant 0 : index
    %0 = vector.load %arg1[%c0, %c0_0] : memref<16x128xbf16, #tpu.memory_space<vmem>>, vector<16x128xbf16>
    %c0_1 = arith.constant 0 : index
    %c0_2 = arith.constant 0 : index
    %1 = vector.load %arg4[%c0_1, %c0_2] : memref<128x128xbf16, #tpu.memory_space<vmem>>, vector<128x128xbf16>
    %cst = arith.constant dense<0.000000e+00> : vector<16x128xf32>
    %2 = tpu.matmul %0, %1, %cst {dimension_numbers = #tpu.dot_dimension_numbers<[1], [0], [0], [1], [0, 0, 1, 1], [], []>} : vector<16x128xbf16>, vector<128x128xbf16>, vector<16x128xf32> -> vector<16x128xf32>
    %c0_3 = arith.constant 0 : index
    %c0_4 = arith.constant 0 : index
    %3 = vector.load %arg2[%c0_3, %c0_4] : memref<16x128xbf16, #tpu.memory_space<vmem>>, vector<16x128xbf16>
    %c0_5 = arith.constant 0 : index
    %c0_6 = arith.constant 0 : index
    %4 = vector.load %arg5[%c0_5, %c0_6] : memref<128x128xbf16, #tpu.memory_space<vmem>>, vector<128x128xbf16>
    %cst_7 = arith.constant dense<0.000000e+00> : vector<16x128xf32>
    %5 = tpu.matmul %3, %4, %cst_7 {dimension_numbers = #tpu.dot_dimension_numbers<[1], [0], [0], [1], [0, 0, 1, 1], [], []>} : vector<16x128xbf16>, vector<128x128xbf16>, vector<16x128xf32> -> vector<16x128xf32>
    %6 = arith.addf %2, %5 : vector<16x128xf32>
    %c0_8 = arith.constant 0 : index
    %c0_9 = arith.constant 0 : index
    %7 = vector.load %arg3[%c0_8, %c0_9] : memref<16x128xbf16, #tpu.memory_space<vmem>>, vector<16x128xbf16>
    %c0_10 = arith.constant 0 : index
    %c0_11 = arith.constant 0 : index
    %8 = vector.load %arg6[%c0_10, %c0_11] : memref<128x128xbf16, #tpu.memory_space<vmem>>, vector<128x128xbf16>
    %cst_12 = arith.constant dense<0.000000e+00> : vector<16x128xf32>
    %9 = tpu.matmul %7, %8, %cst_12 {dimension_numbers = #tpu.dot_dimension_numbers<[1], [0], [0], [1], [0, 0, 1, 1], [], []>} : vector<16x128xbf16>, vector<128x128xbf16>, vector<16x128xf32> -> vector<16x128xf32>
    %10 = arith.addf %6, %9 : vector<16x128xf32>
    %c0_13 = arith.constant 0 : index
    %c0_14 = arith.constant 0 : index
    %11 = vector.load %arg7[%c0_13, %c0_14] : memref<1x128xf32, #tpu.memory_space<vmem>>, vector<1x128xf32>
    %12 = vector.broadcast %11 : vector<1x128xf32> to vector<16x128xf32>
    %13 = arith.addf %10, %12 : vector<16x128xf32>
    %cst_15 = arith.constant 0.000000e+00 : f32
    %14 = vector.broadcast %cst_15 : f32 to vector<16x128xf32>
    %15 = arith.maximumf %13, %14 : vector<16x128xf32>
    %16 = math.absf %13 : vector<16x128xf32>
    %cst_16 = arith.constant 0.000000e+00 : f32
    %17 = vector.broadcast %cst_16 : f32 to vector<16x128xf32>
    %18 = arith.subf %17, %16 : vector<16x128xf32>
    %19 = math.exp %18 : vector<16x128xf32>
    %20 = math.log1p %19 : vector<16x128xf32>
    %21 = arith.addf %15, %20 : vector<16x128xf32>
    %cst_17 = arith.constant 0.693147182 : f32
    %22 = vector.broadcast %cst_17 : f32 to vector<16x128xf32>
    %23 = arith.subf %21, %22 : vector<16x128xf32>
    %24 = arith.truncf %23 : vector<16x128xf32> to vector<16x128xbf16>
    %c0_18 = arith.constant 0 : index
    %c0_19 = arith.constant 0 : index
    %25 = vector.load %arg8[%c0_18, %c0_19] : memref<128x128xbf16, #tpu.memory_space<vmem>>, vector<128x128xbf16>
    %cst_20 = arith.constant dense<0.000000e+00> : vector<16x128xf32>
    %26 = tpu.matmul %24, %25, %cst_20 {dimension_numbers = #tpu.dot_dimension_numbers<[1], [0], [0], [1], [0, 0, 1, 1], [], []>} : vector<16x128xbf16>, vector<128x128xbf16>, vector<16x128xf32> -> vector<16x128xf32>
    %c0_21 = arith.constant 0 : index
    %c0_22 = arith.constant 0 : index
    %27 = vector.load %arg9[%c0_21, %c0_22] : memref<1x128xf32, #tpu.memory_space<vmem>>, vector<1x128xf32>
    %28 = vector.broadcast %27 : vector<1x128xf32> to vector<16x128xf32>
    %29 = arith.addf %26, %28 : vector<16x128xf32>
    %30 = arith.truncf %29 : vector<16x128xf32> to vector<16x128xbf16>
    %c0_23 = arith.constant 0 : index
    %c0_24 = arith.constant 0 : index
    %31 = vector.load %arg14[%c0_23, %c0_24] : memref<16x128xbf16, #tpu.memory_space<vmem>>, vector<16x128xbf16>
    tpu.vector_store %arg14[%c0_23, %c0_24], %30 {strides = array<i32>} : memref<16x128xbf16, #tpu.memory_space<vmem>>, vector<16x128xbf16>,
    %32 = arith.truncf %29 : vector<16x128xf32> to vector<16x128xbf16>
    %c0_25 = arith.constant 0 : index
    %c0_26 = arith.constant 0 : index
    %33 = vector.load %arg10[%c0_25, %c0_26] : memref<128x128xbf16, #tpu.memory_space<vmem>>, vector<128x128xbf16>
    %cst_27 = arith.constant dense<0.000000e+00> : vector<16x128xf32>
    %34 = tpu.matmul %32, %33, %cst_27 {dimension_numbers = #tpu.dot_dimension_numbers<[1], [0], [0], [1], [0, 0, 1, 1], [], []>} : vector<16x128xbf16>, vector<128x128xbf16>, vector<16x128xf32> -> vector<16x128xf32>
    %c0_28 = arith.constant 0 : index
    %c0_29 = arith.constant 0 : index
    %35 = vector.load %arg11[%c0_28, %c0_29] : memref<1x128xf32, #tpu.memory_space<vmem>>, vector<1x128xf32>
    %36 = vector.broadcast %35 : vector<1x128xf32> to vector<16x128xf32>
    %37 = arith.addf %34, %36 : vector<16x128xf32>
    %cst_30 = arith.constant 0.000000e+00 : f32
    %38 = vector.broadcast %cst_30 : f32 to vector<16x128xf32>
    %39 = arith.maximumf %37, %38 : vector<16x128xf32>
    %40 = math.absf %37 : vector<16x128xf32>
    %cst_31 = arith.constant 0.000000e+00 : f32
    %41 = vector.broadcast %cst_31 : f32 to vector<16x128xf32>
    %42 = arith.subf %41, %40 : vector<16x128xf32>
    %43 = math.exp %42 : vector<16x128xf32>
    %44 = math.log1p %43 : vector<16x128xf32>
    %45 = arith.addf %39, %44 : vector<16x128xf32>
    %cst_32 = arith.constant 0.693147182 : f32
    %46 = vector.broadcast %cst_32 : f32 to vector<16x128xf32>
    %47 = arith.subf %45, %46 : vector<16x128xf32>
    %48 = arith.truncf %47 : vector<16x128xf32> to vector<16x128xbf16>
    %c0_33 = arith.constant 0 : index
    %c0_34 = arith.constant 0 : index
    %49 = vector.load %arg12[%c0_33, %c0_34] : memref<128x128xbf16, #tpu.memory_space<vmem>>, vector<128x128xbf16>
    %cst_35 = arith.constant dense<0.000000e+00> : vector<16x128xf32>
    %50 = tpu.matmul %48, %49, %cst_35 {dimension_numbers = #tpu.dot_dimension_numbers<[1], [0], [0], [1], [0, 0, 1, 1], [], []>} : vector<16x128xbf16>, vector<128x128xbf16>, vector<16x128xf32> -> vector<16x128xf32>
    %c0_36 = arith.constant 0 : index
    %c0_37 = arith.constant 0 : index
    %51 = vector.load %arg13[%c0_36, %c0_37] : memref<1x128xf32, #tpu.memory_space<vmem>>, vector<1x128xf32>
    %52 = vector.broadcast %51 : vector<1x128xf32> to vector<16x128xf32>
    %53 = arith.addf %50, %52 : vector<16x128xf32>
    %54 = arith.truncf %53 : vector<16x128xf32> to vector<16x128xbf16>
    %c0_38 = arith.constant 0 : index
    %c0_39 = arith.constant 0 : index
    %55 = vector.load %arg15[%c0_38, %c0_39] : memref<16x128xbf16, #tpu.memory_space<vmem>>, vector<16x128xbf16>
    tpu.vector_store %arg15[%c0_38, %c0_39], %54 {strides = array<i32>} : memref<16x128xbf16, #tpu.memory_space<vmem>>, vector<16x128xbf16>,
    return
  }
  func.func @transform_0(%arg0: i32) -> (i32, i32) {
    %c0_i32 = arith.constant 0 : i32
    %c0_i32_0 = arith.constant 0 : i32
    return %arg0, %c0_i32 : i32, i32
  }
  func.func @transform_1(%arg0: i32) -> (i32, i32) {
    %c0_i32 = arith.constant 0 : i32
    %c0_i32_0 = arith.constant 0 : i32
    return %arg0, %c0_i32 : i32, i32
  }
  func.func @transform_2(%arg0: i32) -> (i32, i32) {
    %c0_i32 = arith.constant 0 : i32
    %c0_i32_0 = arith.constant 0 : i32
    return %arg0, %c0_i32 : i32, i32
  }
  func.func @transform_3(%arg0: i32) -> (i32, i32) {
    %c0_i32 = arith.constant 0 : i32
    %c0_i32_0 = arith.constant 0 : i32
    %c0_i32_1 = arith.constant 0 : i32
    return %c0_i32, %c0_i32_0 : i32, i32
  }
  func.func @transform_4(%arg0: i32) -> (i32, i32) {
    %c0_i32 = arith.constant 0 : i32
    %c0_i32_0 = arith.constant 0 : i32
    %c0_i32_1 = arith.constant 0 : i32
    return %c0_i32, %c0_i32_0 : i32, i32
  }
  func.func @transform_5(%arg0: i32) -> (i32, i32) {
    %c0_i32 = arith.constant 0 : i32
    %c0_i32_0 = arith.constant 0 : i32
    %c0_i32_1 = arith.constant 0 : i32
    return %c0_i32, %c0_i32_0 : i32, i32
  }
  func.func @transform_6(%arg0: i32) -> (i32, i32) {
    %c0_i32 = arith.constant 0 : i32
    %c0_i32_0 = arith.constant 0 : i32
    %c0_i32_1 = arith.constant 0 : i32
    return %c0_i32, %c0_i32_0 : i32, i32
  }
  func.func @transform_7(%arg0: i32) -> (i32, i32) {
    %c0_i32 = arith.constant 0 : i32
    %c0_i32_0 = arith.constant 0 : i32
    %c0_i32_1 = arith.constant 0 : i32
    return %c0_i32, %c0_i32_0 : i32, i32
  }
  func.func @transform_8(%arg0: i32) -> (i32, i32) {
    %c0_i32 = arith.constant 0 : i32
    %c0_i32_0 = arith.constant 0 : i32
    %c0_i32_1 = arith.constant 0 : i32
    return %c0_i32, %c0_i32_0 : i32, i32
  }
  func.func @transform_9(%arg0: i32) -> (i32, i32) {
    %c0_i32 = arith.constant 0 : i32
    %c0_i32_0 = arith.constant 0 : i32
    %c0_i32_1 = arith.constant 0 : i32
    return %c0_i32, %c0_i32_0 : i32, i32
  }
  func.func @transform_10(%arg0: i32) -> (i32, i32) {
    %c0_i32 = arith.constant 0 : i32
    %c0_i32_0 = arith.constant 0 : i32
    %c0_i32_1 = arith.constant 0 : i32
    return %c0_i32, %c0_i32_0 : i32, i32
  }
  func.func @transform_11(%arg0: i32) -> (i32, i32) {
    %c0_i32 = arith.constant 0 : i32
    %c0_i32_0 = arith.constant 0 : i32
    %c0_i32_1 = arith.constant 0 : i32
    return %c0_i32, %c0_i32_0 : i32, i32
  }
  func.func @transform_12(%arg0: i32) -> (i32, i32) {
    %c0_i32 = arith.constant 0 : i32
    %c0_i32_0 = arith.constant 0 : i32
    %c0_i32_1 = arith.constant 0 : i32
    return %c0_i32, %c0_i32_0 : i32, i32
  }
  func.func @transform_13(%arg0: i32) -> (i32, i32) {
    %c0_i32 = arith.constant 0 : i32
    %c0_i32_0 = arith.constant 0 : i32
    return %arg0, %c0_i32 : i32, i32
  }
  func.func @transform_14(%arg0: i32) -> (i32, i32) {
    %c0_i32 = arith.constant 0 : i32
    %c0_i32_0 = arith.constant 0 : i32
    return %arg0, %c0_i32 : i32, i32
  }
}

module attributes {stable_mosaic.version = 11 : i64} {
  func.func @_agg_node_kernel(%arg0: i32, %arg1: i32, %arg2: memref<8x16xbf16, #tpu.memory_space<vmem>>, %arg3: memref<16x128xbf16, #tpu.memory_space<vmem>>, %arg4: memref<8x128xf32, #tpu.memory_space<vmem>>, %arg5: memref<128x128xbf16, #tpu.memory_space<vmem>>, %arg6: memref<1x128xf32, #tpu.memory_space<vmem>>, %arg7: memref<128x128xbf16, #tpu.memory_space<vmem>>, %arg8: memref<1x128xf32, #tpu.memory_space<vmem>>, %arg9: memref<8x128xf32, #tpu.memory_space<vmem>>, %arg10: memref<8x128xf32, #tpu.memory_space<vmem>>) attributes {dimension_semantics = [#tpu.dimension_semantics<parallel>, #tpu.dimension_semantics<arbitrary>], iteration_bounds = array<i64: 1, 1>, scalar_prefetch = 0 : i64, scratch_operands = 1 : i64, tpu.core_type = #tpu.core_type<tc>, window_params = [{transform_indices = @transform_0, window_bounds = array<i64: 8, 16>}, {transform_indices = @transform_1, window_bounds = array<i64: 16, 128>}, {transform_indices = @transform_2, window_bounds = array<i64: 8, 128>}, {pipeline_mode = #tpu.pipeline_mode<synchronous>, transform_indices = @transform_3, window_bounds = array<i64: 128, 128>}, {pipeline_mode = #tpu.pipeline_mode<synchronous>, transform_indices = @transform_4, window_bounds = array<i64: 1, 128>}, {pipeline_mode = #tpu.pipeline_mode<synchronous>, transform_indices = @transform_5, window_bounds = array<i64: 128, 128>}, {pipeline_mode = #tpu.pipeline_mode<synchronous>, transform_indices = @transform_6, window_bounds = array<i64: 1, 128>}, {transform_indices = @transform_7, window_bounds = array<i64: 8, 128>}]} {
    %c0_i32 = arith.constant 0 : i32
    %0 = arith.cmpi eq, %arg1, %c0_i32 : i32
    %1 = arith.extui %0 : i1 to i32
    %c0_i32_0 = arith.constant 0 : i32
    %2 = arith.cmpi ne, %1, %c0_i32_0 : i32
    scf.if %2 {
      %cst_10 = arith.constant 0.000000e+00 : f32
      %12 = vector.broadcast %cst_10 : f32 to vector<8x128xf32>
      %c0_11 = arith.constant 0 : index
      %c0_12 = arith.constant 0 : index
      %13 = vector.load %arg10[%c0_11, %c0_12] : memref<8x128xf32, #tpu.memory_space<vmem>>, vector<8x128xf32>
      tpu.vector_store %arg10[%c0_11, %c0_12], %12 {strides = array<i32>} : memref<8x128xf32, #tpu.memory_space<vmem>>, vector<8x128xf32>,
    } else {
    }
    %c0 = arith.constant 0 : index
    %c0_1 = arith.constant 0 : index
    %3 = vector.load %arg10[%c0, %c0_1] : memref<8x128xf32, #tpu.memory_space<vmem>>, vector<8x128xf32>
    %c0_2 = arith.constant 0 : index
    %c0_3 = arith.constant 0 : index
    %4 = vector.load %arg2[%c0_2, %c0_3] : memref<8x16xbf16, #tpu.memory_space<vmem>>, vector<8x16xbf16>
    %c0_4 = arith.constant 0 : index
    %c0_5 = arith.constant 0 : index
    %5 = vector.load %arg3[%c0_4, %c0_5] : memref<16x128xbf16, #tpu.memory_space<vmem>>, vector<16x128xbf16>
    %cst = arith.constant dense<0.000000e+00> : vector<8x128xf32>
    %6 = tpu.matmul %4, %5, %cst {dimension_numbers = #tpu.dot_dimension_numbers<[1], [0], [0], [1], [0, 0, 1, 1], [], []>} : vector<8x16xbf16>, vector<16x128xbf16>, vector<8x128xf32> -> vector<8x128xf32>
    %7 = arith.addf %3, %6 : vector<8x128xf32>
    %c0_6 = arith.constant 0 : index
    %c0_7 = arith.constant 0 : index
    %8 = vector.load %arg10[%c0_6, %c0_7] : memref<8x128xf32, #tpu.memory_space<vmem>>, vector<8x128xf32>
    tpu.vector_store %arg10[%c0_6, %c0_7], %7 {strides = array<i32>} : memref<8x128xf32, #tpu.memory_space<vmem>>, vector<8x128xf32>,
    %c0_i32_8 = arith.constant 0 : i32
    %9 = arith.cmpi eq, %arg1, %c0_i32_8 : i32
    %10 = arith.extui %9 : i1 to i32
    %c0_i32_9 = arith.constant 0 : i32
    %11 = arith.cmpi ne, %10, %c0_i32_9 : i32
    scf.if %11 {
      %c0_10 = arith.constant 0 : index
      %c0_11 = arith.constant 0 : index
      %12 = vector.load %arg10[%c0_10, %c0_11] : memref<8x128xf32, #tpu.memory_space<vmem>>, vector<8x128xf32>
      %13 = arith.truncf %12 : vector<8x128xf32> to vector<8x128xbf16>
      %c0_12 = arith.constant 0 : index
      %c0_13 = arith.constant 0 : index
      %14 = vector.load %arg5[%c0_12, %c0_13] : memref<128x128xbf16, #tpu.memory_space<vmem>>, vector<128x128xbf16>
      %cst_14 = arith.constant dense<0.000000e+00> : vector<8x128xf32>
      %15 = tpu.matmul %13, %14, %cst_14 {dimension_numbers = #tpu.dot_dimension_numbers<[1], [0], [0], [1], [0, 0, 1, 1], [], []>} : vector<8x128xbf16>, vector<128x128xbf16>, vector<8x128xf32> -> vector<8x128xf32>
      %c0_15 = arith.constant 0 : index
      %c0_16 = arith.constant 0 : index
      %16 = vector.load %arg6[%c0_15, %c0_16] : memref<1x128xf32, #tpu.memory_space<vmem>>, vector<1x128xf32>
      %17 = vector.broadcast %16 : vector<1x128xf32> to vector<8x128xf32>
      %18 = arith.addf %15, %17 : vector<8x128xf32>
      %cst_17 = arith.constant 0.000000e+00 : f32
      %19 = vector.broadcast %cst_17 : f32 to vector<8x128xf32>
      %20 = arith.maximumf %18, %19 : vector<8x128xf32>
      %21 = math.absf %18 : vector<8x128xf32>
      %cst_18 = arith.constant 0.000000e+00 : f32
      %22 = vector.broadcast %cst_18 : f32 to vector<8x128xf32>
      %23 = arith.subf %22, %21 : vector<8x128xf32>
      %24 = math.exp %23 : vector<8x128xf32>
      %25 = math.log1p %24 : vector<8x128xf32>
      %26 = arith.addf %20, %25 : vector<8x128xf32>
      %cst_19 = arith.constant 0.693147182 : f32
      %27 = vector.broadcast %cst_19 : f32 to vector<8x128xf32>
      %28 = arith.subf %26, %27 : vector<8x128xf32>
      %29 = arith.truncf %28 : vector<8x128xf32> to vector<8x128xbf16>
      %c0_20 = arith.constant 0 : index
      %c0_21 = arith.constant 0 : index
      %30 = vector.load %arg7[%c0_20, %c0_21] : memref<128x128xbf16, #tpu.memory_space<vmem>>, vector<128x128xbf16>
      %cst_22 = arith.constant dense<0.000000e+00> : vector<8x128xf32>
      %31 = tpu.matmul %29, %30, %cst_22 {dimension_numbers = #tpu.dot_dimension_numbers<[1], [0], [0], [1], [0, 0, 1, 1], [], []>} : vector<8x128xbf16>, vector<128x128xbf16>, vector<8x128xf32> -> vector<8x128xf32>
      %c0_23 = arith.constant 0 : index
      %c0_24 = arith.constant 0 : index
      %32 = vector.load %arg8[%c0_23, %c0_24] : memref<1x128xf32, #tpu.memory_space<vmem>>, vector<1x128xf32>
      %33 = vector.broadcast %32 : vector<1x128xf32> to vector<8x128xf32>
      %34 = arith.addf %31, %33 : vector<8x128xf32>
      %c0_25 = arith.constant 0 : index
      %c0_26 = arith.constant 0 : index
      %35 = vector.load %arg4[%c0_25, %c0_26] : memref<8x128xf32, #tpu.memory_space<vmem>>, vector<8x128xf32>
      %36 = arith.addf %35, %34 : vector<8x128xf32>
      %c0_27 = arith.constant 0 : index
      %c0_28 = arith.constant 0 : index
      %37 = vector.load %arg9[%c0_27, %c0_28] : memref<8x128xf32, #tpu.memory_space<vmem>>, vector<8x128xf32>
      tpu.vector_store %arg9[%c0_27, %c0_28], %36 {strides = array<i32>} : memref<8x128xf32, #tpu.memory_space<vmem>>, vector<8x128xf32>,
    } else {
    }
    return
  }
  func.func @transform_0(%arg0: i32, %arg1: i32) -> (i32, i32) {
    %c0_i32 = arith.constant 0 : i32
    return %arg0, %arg1 : i32, i32
  }
  func.func @transform_1(%arg0: i32, %arg1: i32) -> (i32, i32) {
    %c0_i32 = arith.constant 0 : i32
    %c0_i32_0 = arith.constant 0 : i32
    return %arg1, %c0_i32 : i32, i32
  }
  func.func @transform_2(%arg0: i32, %arg1: i32) -> (i32, i32) {
    %c0_i32 = arith.constant 0 : i32
    %c0_i32_0 = arith.constant 0 : i32
    return %arg0, %c0_i32 : i32, i32
  }
  func.func @transform_3(%arg0: i32, %arg1: i32) -> (i32, i32) {
    %c0_i32 = arith.constant 0 : i32
    %c0_i32_0 = arith.constant 0 : i32
    %c0_i32_1 = arith.constant 0 : i32
    return %c0_i32, %c0_i32_0 : i32, i32
  }
  func.func @transform_4(%arg0: i32, %arg1: i32) -> (i32, i32) {
    %c0_i32 = arith.constant 0 : i32
    %c0_i32_0 = arith.constant 0 : i32
    %c0_i32_1 = arith.constant 0 : i32
    return %c0_i32, %c0_i32_0 : i32, i32
  }
  func.func @transform_5(%arg0: i32, %arg1: i32) -> (i32, i32) {
    %c0_i32 = arith.constant 0 : i32
    %c0_i32_0 = arith.constant 0 : i32
    %c0_i32_1 = arith.constant 0 : i32
    return %c0_i32, %c0_i32_0 : i32, i32
  }
  func.func @transform_6(%arg0: i32, %arg1: i32) -> (i32, i32) {
    %c0_i32 = arith.constant 0 : i32
    %c0_i32_0 = arith.constant 0 : i32
    %c0_i32_1 = arith.constant 0 : i32
    return %c0_i32, %c0_i32_0 : i32, i32
  }
  func.func @transform_7(%arg0: i32, %arg1: i32) -> (i32, i32) {
    %c0_i32 = arith.constant 0 : i32
    %c0_i32_0 = arith.constant 0 : i32
    return %arg0, %c0_i32 : i32, i32
  }
}

module attributes {stable_mosaic.version = 11 : i64} {
  func.func @_edge_update_kernel(%arg0: i32, %arg1: memref<16x128xbf16, #tpu.memory_space<vmem>>, %arg2: memref<16x128xbf16, #tpu.memory_space<vmem>>, %arg3: memref<16x128xbf16, #tpu.memory_space<vmem>>, %arg4: memref<128x128xbf16, #tpu.memory_space<vmem>>, %arg5: memref<128x128xbf16, #tpu.memory_space<vmem>>, %arg6: memref<128x128xbf16, #tpu.memory_space<vmem>>, %arg7: memref<1x128xf32, #tpu.memory_space<vmem>>, %arg8: memref<128x128xbf16, #tpu.memory_space<vmem>>, %arg9: memref<1x128xf32, #tpu.memory_space<vmem>>, %arg10: memref<128x128xbf16, #tpu.memory_space<vmem>>, %arg11: memref<1x128xf32, #tpu.memory_space<vmem>>, %arg12: memref<128x128xbf16, #tpu.memory_space<vmem>>, %arg13: memref<1x128xf32, #tpu.memory_space<vmem>>, %arg14: memref<16x128xbf16, #tpu.memory_space<vmem>>, %arg15: memref<16x128xbf16, #tpu.memory_space<vmem>>) attributes {dimension_semantics = [#tpu.dimension_semantics<parallel>], iteration_bounds = array<i64: 1>, scalar_prefetch = 0 : i64, scratch_operands = 0 : i64, tpu.core_type = #tpu.core_type<tc>, window_params = [{transform_indices = @transform_0, window_bounds = array<i64: 16, 128>}, {transform_indices = @transform_1, window_bounds = array<i64: 16, 128>}, {transform_indices = @transform_2, window_bounds = array<i64: 16, 128>}, {pipeline_mode = #tpu.pipeline_mode<synchronous>, transform_indices = @transform_3, window_bounds = array<i64: 128, 128>}, {pipeline_mode = #tpu.pipeline_mode<synchronous>, transform_indices = @transform_4, window_bounds = array<i64: 128, 128>}, {pipeline_mode = #tpu.pipeline_mode<synchronous>, transform_indices = @transform_5, window_bounds = array<i64: 128, 128>}, {pipeline_mode = #tpu.pipeline_mode<synchronous>, transform_indices = @transform_6, window_bounds = array<i64: 1, 128>}, {pipeline_mode = #tpu.pipeline_mode<synchronous>, transform_indices = @transform_7, window_bounds = array<i64: 128, 128>}, {pipeline_mode = #tpu.pipeline_mode<synchronous>, transform_indices = @transform_8, window_bounds = array<i64: 1, 128>}, {pipeline_mode = #tpu.pipeline_mode<synchronous>, transform_indices = @transform_9, window_bounds = array<i64: 128, 128>}, {pipeline_mode = #tpu.pipeline_mode<synchronous>, transform_indices = @transform_10, window_bounds = array<i64: 1, 128>}, {pipeline_mode = #tpu.pipeline_mode<synchronous>, transform_indices = @transform_11, window_bounds = array<i64: 128, 128>}, {pipeline_mode = #tpu.pipeline_mode<synchronous>, transform_indices = @transform_12, window_bounds = array<i64: 1, 128>}, {transform_indices = @transform_13, window_bounds = array<i64: 16, 128>}, {transform_indices = @transform_14, window_bounds = array<i64: 16, 128>}]} {
    %c0 = arith.constant 0 : index
    %c0_0 = arith.constant 0 : index
    %0 = vector.load %arg1[%c0, %c0_0] : memref<16x128xbf16, #tpu.memory_space<vmem>>, vector<16x128xbf16>
    %c0_1 = arith.constant 0 : index
    %c0_2 = arith.constant 0 : index
    %1 = vector.load %arg4[%c0_1, %c0_2] : memref<128x128xbf16, #tpu.memory_space<vmem>>, vector<128x128xbf16>
    %cst = arith.constant dense<0.000000e+00> : vector<16x128xf32>
    %2 = tpu.matmul %0, %1, %cst {dimension_numbers = #tpu.dot_dimension_numbers<[1], [0], [0], [1], [0, 0, 1, 1], [], []>} : vector<16x128xbf16>, vector<128x128xbf16>, vector<16x128xf32> -> vector<16x128xf32>
    %c0_3 = arith.constant 0 : index
    %c0_4 = arith.constant 0 : index
    %3 = vector.load %arg2[%c0_3, %c0_4] : memref<16x128xbf16, #tpu.memory_space<vmem>>, vector<16x128xbf16>
    %c0_5 = arith.constant 0 : index
    %c0_6 = arith.constant 0 : index
    %4 = vector.load %arg5[%c0_5, %c0_6] : memref<128x128xbf16, #tpu.memory_space<vmem>>, vector<128x128xbf16>
    %cst_7 = arith.constant dense<0.000000e+00> : vector<16x128xf32>
    %5 = tpu.matmul %3, %4, %cst_7 {dimension_numbers = #tpu.dot_dimension_numbers<[1], [0], [0], [1], [0, 0, 1, 1], [], []>} : vector<16x128xbf16>, vector<128x128xbf16>, vector<16x128xf32> -> vector<16x128xf32>
    %6 = arith.addf %2, %5 : vector<16x128xf32>
    %c0_8 = arith.constant 0 : index
    %c0_9 = arith.constant 0 : index
    %7 = vector.load %arg3[%c0_8, %c0_9] : memref<16x128xbf16, #tpu.memory_space<vmem>>, vector<16x128xbf16>
    %c0_10 = arith.constant 0 : index
    %c0_11 = arith.constant 0 : index
    %8 = vector.load %arg6[%c0_10, %c0_11] : memref<128x128xbf16, #tpu.memory_space<vmem>>, vector<128x128xbf16>
    %cst_12 = arith.constant dense<0.000000e+00> : vector<16x128xf32>
    %9 = tpu.matmul %7, %8, %cst_12 {dimension_numbers = #tpu.dot_dimension_numbers<[1], [0], [0], [1], [0, 0, 1, 1], [], []>} : vector<16x128xbf16>, vector<128x128xbf16>, vector<16x128xf32> -> vector<16x128xf32>
    %10 = arith.addf %6, %9 : vector<16x128xf32>
    %c0_13 = arith.constant 0 : index
    %c0_14 = arith.constant 0 : index
    %11 = vector.load %arg7[%c0_13, %c0_14] : memref<1x128xf32, #tpu.memory_space<vmem>>, vector<1x128xf32>
    %12 = vector.broadcast %11 : vector<1x128xf32> to vector<16x128xf32>
    %13 = arith.addf %10, %12 : vector<16x128xf32>
    %cst_15 = arith.constant 0.000000e+00 : f32
    %14 = vector.broadcast %cst_15 : f32 to vector<16x128xf32>
    %15 = arith.maximumf %13, %14 : vector<16x128xf32>
    %16 = math.absf %13 : vector<16x128xf32>
    %cst_16 = arith.constant 0.000000e+00 : f32
    %17 = vector.broadcast %cst_16 : f32 to vector<16x128xf32>
    %18 = arith.subf %17, %16 : vector<16x128xf32>
    %19 = math.exp %18 : vector<16x128xf32>
    %20 = math.log1p %19 : vector<16x128xf32>
    %21 = arith.addf %15, %20 : vector<16x128xf32>
    %cst_17 = arith.constant 0.693147182 : f32
    %22 = vector.broadcast %cst_17 : f32 to vector<16x128xf32>
    %23 = arith.subf %21, %22 : vector<16x128xf32>
    %24 = arith.truncf %23 : vector<16x128xf32> to vector<16x128xbf16>
    %c0_18 = arith.constant 0 : index
    %c0_19 = arith.constant 0 : index
    %25 = vector.load %arg8[%c0_18, %c0_19] : memref<128x128xbf16, #tpu.memory_space<vmem>>, vector<128x128xbf16>
    %cst_20 = arith.constant dense<0.000000e+00> : vector<16x128xf32>
    %26 = tpu.matmul %24, %25, %cst_20 {dimension_numbers = #tpu.dot_dimension_numbers<[1], [0], [0], [1], [0, 0, 1, 1], [], []>} : vector<16x128xbf16>, vector<128x128xbf16>, vector<16x128xf32> -> vector<16x128xf32>
    %c0_21 = arith.constant 0 : index
    %c0_22 = arith.constant 0 : index
    %27 = vector.load %arg9[%c0_21, %c0_22] : memref<1x128xf32, #tpu.memory_space<vmem>>, vector<1x128xf32>
    %28 = vector.broadcast %27 : vector<1x128xf32> to vector<16x128xf32>
    %29 = arith.addf %26, %28 : vector<16x128xf32>
    %30 = arith.truncf %29 : vector<16x128xf32> to vector<16x128xbf16>
    %c0_23 = arith.constant 0 : index
    %c0_24 = arith.constant 0 : index
    %31 = vector.load %arg14[%c0_23, %c0_24] : memref<16x128xbf16, #tpu.memory_space<vmem>>, vector<16x128xbf16>
    tpu.vector_store %arg14[%c0_23, %c0_24], %30 {strides = array<i32>} : memref<16x128xbf16, #tpu.memory_space<vmem>>, vector<16x128xbf16>,
    %32 = arith.truncf %29 : vector<16x128xf32> to vector<16x128xbf16>
    %c0_25 = arith.constant 0 : index
    %c0_26 = arith.constant 0 : index
    %33 = vector.load %arg10[%c0_25, %c0_26] : memref<128x128xbf16, #tpu.memory_space<vmem>>, vector<128x128xbf16>
    %cst_27 = arith.constant dense<0.000000e+00> : vector<16x128xf32>
    %34 = tpu.matmul %32, %33, %cst_27 {dimension_numbers = #tpu.dot_dimension_numbers<[1], [0], [0], [1], [0, 0, 1, 1], [], []>} : vector<16x128xbf16>, vector<128x128xbf16>, vector<16x128xf32> -> vector<16x128xf32>
    %c0_28 = arith.constant 0 : index
    %c0_29 = arith.constant 0 : index
    %35 = vector.load %arg11[%c0_28, %c0_29] : memref<1x128xf32, #tpu.memory_space<vmem>>, vector<1x128xf32>
    %36 = vector.broadcast %35 : vector<1x128xf32> to vector<16x128xf32>
    %37 = arith.addf %34, %36 : vector<16x128xf32>
    %cst_30 = arith.constant 0.000000e+00 : f32
    %38 = vector.broadcast %cst_30 : f32 to vector<16x128xf32>
    %39 = arith.maximumf %37, %38 : vector<16x128xf32>
    %40 = math.absf %37 : vector<16x128xf32>
    %cst_31 = arith.constant 0.000000e+00 : f32
    %41 = vector.broadcast %cst_31 : f32 to vector<16x128xf32>
    %42 = arith.subf %41, %40 : vector<16x128xf32>
    %43 = math.exp %42 : vector<16x128xf32>
    %44 = math.log1p %43 : vector<16x128xf32>
    %45 = arith.addf %39, %44 : vector<16x128xf32>
    %cst_32 = arith.constant 0.693147182 : f32
    %46 = vector.broadcast %cst_32 : f32 to vector<16x128xf32>
    %47 = arith.subf %45, %46 : vector<16x128xf32>
    %48 = arith.truncf %47 : vector<16x128xf32> to vector<16x128xbf16>
    %c0_33 = arith.constant 0 : index
    %c0_34 = arith.constant 0 : index
    %49 = vector.load %arg12[%c0_33, %c0_34] : memref<128x128xbf16, #tpu.memory_space<vmem>>, vector<128x128xbf16>
    %cst_35 = arith.constant dense<0.000000e+00> : vector<16x128xf32>
    %50 = tpu.matmul %48, %49, %cst_35 {dimension_numbers = #tpu.dot_dimension_numbers<[1], [0], [0], [1], [0, 0, 1, 1], [], []>} : vector<16x128xbf16>, vector<128x128xbf16>, vector<16x128xf32> -> vector<16x128xf32>
    %c0_36 = arith.constant 0 : index
    %c0_37 = arith.constant 0 : index
    %51 = vector.load %arg13[%c0_36, %c0_37] : memref<1x128xf32, #tpu.memory_space<vmem>>, vector<1x128xf32>
    %52 = vector.broadcast %51 : vector<1x128xf32> to vector<16x128xf32>
    %53 = arith.addf %50, %52 : vector<16x128xf32>
    %54 = arith.truncf %53 : vector<16x128xf32> to vector<16x128xbf16>
    %c0_38 = arith.constant 0 : index
    %c0_39 = arith.constant 0 : index
    %55 = vector.load %arg15[%c0_38, %c0_39] : memref<16x128xbf16, #tpu.memory_space<vmem>>, vector<16x128xbf16>
    tpu.vector_store %arg15[%c0_38, %c0_39], %54 {strides = array<i32>} : memref<16x128xbf16, #tpu.memory_space<vmem>>, vector<16x128xbf16>,
    return
  }
  func.func @transform_0(%arg0: i32) -> (i32, i32) {
    %c0_i32 = arith.constant 0 : i32
    %c0_i32_0 = arith.constant 0 : i32
    return %arg0, %c0_i32 : i32, i32
  }
  func.func @transform_1(%arg0: i32) -> (i32, i32) {
    %c0_i32 = arith.constant 0 : i32
    %c0_i32_0 = arith.constant 0 : i32
    return %arg0, %c0_i32 : i32, i32
  }
  func.func @transform_2(%arg0: i32) -> (i32, i32) {
    %c0_i32 = arith.constant 0 : i32
    %c0_i32_0 = arith.constant 0 : i32
    return %arg0, %c0_i32 : i32, i32
  }
  func.func @transform_3(%arg0: i32) -> (i32, i32) {
    %c0_i32 = arith.constant 0 : i32
    %c0_i32_0 = arith.constant 0 : i32
    %c0_i32_1 = arith.constant 0 : i32
    return %c0_i32, %c0_i32_0 : i32, i32
  }
  func.func @transform_4(%arg0: i32) -> (i32, i32) {
    %c0_i32 = arith.constant 0 : i32
    %c0_i32_0 = arith.constant 0 : i32
    %c0_i32_1 = arith.constant 0 : i32
    return %c0_i32, %c0_i32_0 : i32, i32
  }
  func.func @transform_5(%arg0: i32) -> (i32, i32) {
    %c0_i32 = arith.constant 0 : i32
    %c0_i32_0 = arith.constant 0 : i32
    %c0_i32_1 = arith.constant 0 : i32
    return %c0_i32, %c0_i32_0 : i32, i32
  }
  func.func @transform_6(%arg0: i32) -> (i32, i32) {
    %c0_i32 = arith.constant 0 : i32
    %c0_i32_0 = arith.constant 0 : i32
    %c0_i32_1 = arith.constant 0 : i32
    return %c0_i32, %c0_i32_0 : i32, i32
  }
  func.func @transform_7(%arg0: i32) -> (i32, i32) {
    %c0_i32 = arith.constant 0 : i32
    %c0_i32_0 = arith.constant 0 : i32
    %c0_i32_1 = arith.constant 0 : i32
    return %c0_i32, %c0_i32_0 : i32, i32
  }
  func.func @transform_8(%arg0: i32) -> (i32, i32) {
    %c0_i32 = arith.constant 0 : i32
    %c0_i32_0 = arith.constant 0 : i32
    %c0_i32_1 = arith.constant 0 : i32
    return %c0_i32, %c0_i32_0 : i32, i32
  }
  func.func @transform_9(%arg0: i32) -> (i32, i32) {
    %c0_i32 = arith.constant 0 : i32
    %c0_i32_0 = arith.constant 0 : i32
    %c0_i32_1 = arith.constant 0 : i32
    return %c0_i32, %c0_i32_0 : i32, i32
  }
  func.func @transform_10(%arg0: i32) -> (i32, i32) {
    %c0_i32 = arith.constant 0 : i32
    %c0_i32_0 = arith.constant 0 : i32
    %c0_i32_1 = arith.constant 0 : i32
    return %c0_i32, %c0_i32_0 : i32, i32
  }
  func.func @transform_11(%arg0: i32) -> (i32, i32) {
    %c0_i32 = arith.constant 0 : i32
    %c0_i32_0 = arith.constant 0 : i32
    %c0_i32_1 = arith.constant 0 : i32
    return %c0_i32, %c0_i32_0 : i32, i32
  }
  func.func @transform_12(%arg0: i32) -> (i32, i32) {
    %c0_i32 = arith.constant 0 : i32
    %c0_i32_0 = arith.constant 0 : i32
    %c0_i32_1 = arith.constant 0 : i32
    return %c0_i32, %c0_i32_0 : i32, i32
  }
  func.func @transform_13(%arg0: i32) -> (i32, i32) {
    %c0_i32 = arith.constant 0 : i32
    %c0_i32_0 = arith.constant 0 : i32
    return %arg0, %c0_i32 : i32, i32
  }
  func.func @transform_14(%arg0: i32) -> (i32, i32) {
    %c0_i32 = arith.constant 0 : i32
    %c0_i32_0 = arith.constant 0 : i32
    return %arg0, %c0_i32 : i32, i32
  }
}

module attributes {stable_mosaic.version = 11 : i64} {
  func.func @_readout_kernel(%arg0: i32, %arg1: memref<8x128xf32, #tpu.memory_space<vmem>>, %arg2: memref<128x128xbf16, #tpu.memory_space<vmem>>, %arg3: memref<1x128xf32, #tpu.memory_space<vmem>>, %arg4: memref<128x128xbf16, #tpu.memory_space<vmem>>, %arg5: memref<1x128xf32, #tpu.memory_space<vmem>>, %arg6: memref<8x1xf32, #tpu.memory_space<vmem>>, %arg7: memref<1x128xf32, #tpu.memory_space<vmem>>) attributes {dimension_semantics = [#tpu.dimension_semantics<arbitrary>], iteration_bounds = array<i64: 1>, scalar_prefetch = 0 : i64, scratch_operands = 0 : i64, tpu.core_type = #tpu.core_type<tc>, window_params = [{pipeline_mode = #tpu.pipeline_mode<synchronous>, transform_indices = @transform_0, window_bounds = array<i64: 8, 128>}, {pipeline_mode = #tpu.pipeline_mode<synchronous>, transform_indices = @transform_1, window_bounds = array<i64: 128, 128>}, {pipeline_mode = #tpu.pipeline_mode<synchronous>, transform_indices = @transform_2, window_bounds = array<i64: 1, 128>}, {pipeline_mode = #tpu.pipeline_mode<synchronous>, transform_indices = @transform_3, window_bounds = array<i64: 128, 128>}, {pipeline_mode = #tpu.pipeline_mode<synchronous>, transform_indices = @transform_4, window_bounds = array<i64: 1, 128>}, {pipeline_mode = #tpu.pipeline_mode<synchronous>, transform_indices = @transform_5, window_bounds = array<i64: 8, 1>}, {pipeline_mode = #tpu.pipeline_mode<synchronous>, transform_indices = @transform_6, window_bounds = array<i64: 1, 128>}]} {
    %c0 = arith.constant 0 : index
    %c0_0 = arith.constant 0 : index
    %0 = vector.load %arg1[%c0, %c0_0] : memref<8x128xf32, #tpu.memory_space<vmem>>, vector<8x128xf32>
    %1 = arith.truncf %0 : vector<8x128xf32> to vector<8x128xbf16>
    %c0_1 = arith.constant 0 : index
    %c0_2 = arith.constant 0 : index
    %2 = vector.load %arg2[%c0_1, %c0_2] : memref<128x128xbf16, #tpu.memory_space<vmem>>, vector<128x128xbf16>
    %cst = arith.constant dense<0.000000e+00> : vector<8x128xf32>
    %3 = tpu.matmul %1, %2, %cst {dimension_numbers = #tpu.dot_dimension_numbers<[1], [0], [0], [1], [0, 0, 1, 1], [], []>} : vector<8x128xbf16>, vector<128x128xbf16>, vector<8x128xf32> -> vector<8x128xf32>
    %c0_3 = arith.constant 0 : index
    %c0_4 = arith.constant 0 : index
    %4 = vector.load %arg3[%c0_3, %c0_4] : memref<1x128xf32, #tpu.memory_space<vmem>>, vector<1x128xf32>
    %5 = vector.broadcast %4 : vector<1x128xf32> to vector<8x128xf32>
    %6 = arith.addf %3, %5 : vector<8x128xf32>
    %cst_5 = arith.constant 0.000000e+00 : f32
    %7 = vector.broadcast %cst_5 : f32 to vector<8x128xf32>
    %8 = arith.maximumf %6, %7 : vector<8x128xf32>
    %9 = math.absf %6 : vector<8x128xf32>
    %cst_6 = arith.constant 0.000000e+00 : f32
    %10 = vector.broadcast %cst_6 : f32 to vector<8x128xf32>
    %11 = arith.subf %10, %9 : vector<8x128xf32>
    %12 = math.exp %11 : vector<8x128xf32>
    %13 = math.log1p %12 : vector<8x128xf32>
    %14 = arith.addf %8, %13 : vector<8x128xf32>
    %cst_7 = arith.constant 0.693147182 : f32
    %15 = vector.broadcast %cst_7 : f32 to vector<8x128xf32>
    %16 = arith.subf %14, %15 : vector<8x128xf32>
    %17 = arith.truncf %16 : vector<8x128xf32> to vector<8x128xbf16>
    %c0_8 = arith.constant 0 : index
    %c0_9 = arith.constant 0 : index
    %18 = vector.load %arg4[%c0_8, %c0_9] : memref<128x128xbf16, #tpu.memory_space<vmem>>, vector<128x128xbf16>
    %cst_10 = arith.constant dense<0.000000e+00> : vector<8x128xf32>
    %19 = tpu.matmul %17, %18, %cst_10 {dimension_numbers = #tpu.dot_dimension_numbers<[1], [0], [0], [1], [0, 0, 1, 1], [], []>} : vector<8x128xbf16>, vector<128x128xbf16>, vector<8x128xf32> -> vector<8x128xf32>
    %c0_11 = arith.constant 0 : index
    %c0_12 = arith.constant 0 : index
    %20 = vector.load %arg5[%c0_11, %c0_12] : memref<1x128xf32, #tpu.memory_space<vmem>>, vector<1x128xf32>
    %21 = vector.broadcast %20 : vector<1x128xf32> to vector<8x128xf32>
    %22 = arith.addf %19, %21 : vector<8x128xf32>
    %c0_13 = arith.constant 0 : index
    %c0_14 = arith.constant 0 : index
    %23 = vector.load %arg6[%c0_13, %c0_14] : memref<8x1xf32, #tpu.memory_space<vmem>>, vector<8x1xf32>
    %24 = vector.broadcast %23 : vector<8x1xf32> to vector<8x128xf32>
    %25 = arith.mulf %22, %24 : vector<8x128xf32>
    %cst_15 = arith.constant dense<0.000000e+00> : vector<128xf32>
    %26 = vector.multi_reduction <add>, %25, %cst_15 [0] : vector<8x128xf32> to vector<128xf32>
    %27 = vector.shape_cast %26 : vector<128xf32> to vector<1x128xf32>
    %c0_16 = arith.constant 0 : index
    %c0_17 = arith.constant 0 : index
    %28 = vector.load %arg7[%c0_16, %c0_17] : memref<1x128xf32, #tpu.memory_space<vmem>>, vector<1x128xf32>
    tpu.vector_store %arg7[%c0_16, %c0_17], %27 {strides = array<i32>} : memref<1x128xf32, #tpu.memory_space<vmem>>, vector<1x128xf32>,
    return
  }
  func.func @transform_0(%arg0: i32) -> (i32, i32) {
    %c0_i32 = arith.constant 0 : i32
    %c0_i32_0 = arith.constant 0 : i32
    %c0_i32_1 = arith.constant 0 : i32
    return %c0_i32, %c0_i32_0 : i32, i32
  }
  func.func @transform_1(%arg0: i32) -> (i32, i32) {
    %c0_i32 = arith.constant 0 : i32
    %c0_i32_0 = arith.constant 0 : i32
    %c0_i32_1 = arith.constant 0 : i32
    return %c0_i32, %c0_i32_0 : i32, i32
  }
  func.func @transform_2(%arg0: i32) -> (i32, i32) {
    %c0_i32 = arith.constant 0 : i32
    %c0_i32_0 = arith.constant 0 : i32
    %c0_i32_1 = arith.constant 0 : i32
    return %c0_i32, %c0_i32_0 : i32, i32
  }
  func.func @transform_3(%arg0: i32) -> (i32, i32) {
    %c0_i32 = arith.constant 0 : i32
    %c0_i32_0 = arith.constant 0 : i32
    %c0_i32_1 = arith.constant 0 : i32
    return %c0_i32, %c0_i32_0 : i32, i32
  }
  func.func @transform_4(%arg0: i32) -> (i32, i32) {
    %c0_i32 = arith.constant 0 : i32
    %c0_i32_0 = arith.constant 0 : i32
    %c0_i32_1 = arith.constant 0 : i32
    return %c0_i32, %c0_i32_0 : i32, i32
  }
  func.func @transform_5(%arg0: i32) -> (i32, i32) {
    %c0_i32 = arith.constant 0 : i32
    %c0_i32_0 = arith.constant 0 : i32
    %c0_i32_1 = arith.constant 0 : i32
    return %c0_i32, %c0_i32_0 : i32, i32
  }
  func.func @transform_6(%arg0: i32) -> (i32, i32) {
    %c0_i32 = arith.constant 0 : i32
    %c0_i32_0 = arith.constant 0 : i32
    %c0_i32_1 = arith.constant 0 : i32
    return %c0_i32, %c0_i32_0 : i32, i32
  }
}

</mosaic_0001>

<bundles_post_ra>
// kernel: nmpeu_forward.8
= control target key start
LH: loop header
LB: loop body
LE: loop exit
PB: predicated region body
PF: predicated region fallthrough
CT: control target
= control target key end

     0   :  { %v40_v0 = vlaneseq  ;;  %v87_v1 = vmov 0   ;;  %s123_s0 = inlined_call_operand.vmem [shape: f32[16,1], index: 0, kind: input, shape index: {}]   ;;  %s124_s2 = inlined_call_operand.<no memory space> [shape: f32[1,1], index: 2, kind: input, shape index: {}]   ;;  %s125_s1 = inlined_call_operand.vmem [shape: f32[1,128], index: 1, kind: input, shape index: {}]   ;;  %s126_s3 = inlined_call_operand.vmem [shape: bf16[16,128], index: 3, kind: output, shape index: {}]  }
   0x1   :  { %81 = vset.pattern.permute.xlu0 %v87_v1  ;;  %v16_v2 = vld [vmem:[%s123_s0] sm:$0xff]  ;;  %82 = vset.pattern.permute.xlu1 %v87_v1  ;;  %v8_v3 = vstv %s124_s2  ;;  %v17_v4 = vld [vmem:[%s123_s0 + $0x8] sm:$0xff] }
   0x2   :  { %21 = vperm.xlu0 %81, %v16_v2   ;;  %9 = vst [vmem:[#allocation2] sm:$0x1] %v8_v3  ;;  %v41_v5 = vshrl.u32 %v40_v0, 7  ;;  %v70_v11 = vld [vmem:[%s125_s1] ss:$0 sm:$0xff] }
   0x4   :  { %v42_v6 = vsub.s32 0, %v41_v5 }
   0x6   :  { %26 = vperm.xlu0 %81, %v17_v4  }
   0x9   :  { %v37_v7 = vld [vmem:[#allocation2] sm:$0x1] }
   0xa   :  { %v38_v8 = vsub.f32 0.0, %v37_v7 }
   0xc   :  { %v43_v9 = vrot.slane %v38_v8, %v42_v6 }
   0xe   :  { %45 = vperm.xlu1 %82, %v43_v9  }
  0x81   :  { %v22_v10 = vpop.permute.xlu0 %21 }
  0x82   :  { %v35_v13 = vsub.f32 %v22_v10, %v70_v11 }
  0x85   :  { %v27_v12 = vpop.permute.xlu0 %26 }
  0x86   :  { %v36_v14 = vsub.f32 %v27_v12, %v70_v11 }
  0x8d   :  { %v46_v15 = vpop.permute.xlu1 %45 }
  0x8e   :  { %v48_v16 = vmul.f32 %v46_v15, %v35_v13  ;;  %v49_v17 = vmul.f32 %v46_v15, %v36_v14 }
  0x90   :  { %v50_v18 = vmul.f32 %v48_v16, %v35_v13  ;;  %v51_v19 = vmul.f32 %v49_v17, %v36_v14 }
  0x92   :  { %v52_v20 = vmul.f32 1.442695, %v50_v18  ;;  %v54_v21 = vmul.f32 1.442695, %v51_v19 }
  0x94   :  { %83 = vpow2.f32 %v52_v20 }
  0x95   :  { %85 = vpow2.f32 %v54_v21 }
  0x9e   :  { %v84_v22 = vpop.eup %83 }
  0x9f   :  { %v86_v23 = vpop.eup %85 }
  0xa0   :  { %v78_v24 = vpack.c.bf16 %v86_v23, %v84_v22 }
  0xa2   :  { %79 = vst [vmem:[%s126_s3] sm:$0xff] %v78_v24  }

// kernel: nmpeu_forward.10
= control target key start
LH: loop header
LB: loop body
LE: loop exit
PB: predicated region body
PF: predicated region fallthrough
CT: control target
= control target key end

     0   :  { %v449_v0 = vmov 0.0   ;;  %vm450_vm0 = vmmov 0   ;;  %vm42_vm1 = vcmask 130048   ;;  %s557_s1 = inlined_call_operand.vmem [shape: bf16[16,128], index: 1, kind: input, shape index: {}]   ;;  %s558_s0 = inlined_call_operand.vmem [shape: bf16[8,16], index: 0, kind: input, shape index: {}]   ;;  %s559_s3 = inlined_call_operand.vmem [shape: bf16[128,128], index: 3, kind: input, shape index: {}]   ;;  %s560_s5 = inlined_call_operand.vmem [shape: bf16[128,128], index: 5, kind: input, shape index: {}]   ;;  %s561_s4 = inlined_call_operand.vmem [shape: f32[1,128], index: 4, kind: input, shape index: {}]   ;;  %s562_s6 = inlined_call_operand.vmem [shape: f32[1,128], index: 6, kind: input, shape index: {}]   ;;  %s563_s2 = inlined_call_operand.vmem [shape: f32[8,128], index: 2, kind: input, shape index: {}]   ;;  %s564_s7 = inlined_call_operand.vmem [shape: f32[8,128], index: 7, kind: output, shape index: {}]  }
   0x1   :  { %380 = vmatprep.subr.bf16.mxu0 %v449_v0  ;;  %v428_v1 = vld [vmem:[%s557_s1] sm:$0xff]   ;;  %382 = vmatprep.mubr.msk.bf16.mxu0 %vm450_vm0, %v449_v0  ;;  %v430_v4 = vld [vmem:[%s559_s3 + $0x8] sm:$0xff]   ;;  %v431_v5 = vld [vmem:[%s559_s3 + $0x10] sm:$0xff]  }
   0x2   :  { %v33_v2 = vld [vmem:[%s558_s0] sm:$0xf]  ;;  %386 = vmatprep.subr.bf16.mxu1 %v449_v0  ;;  %402 = vmatprep.mubr.msk.bf16.mxu1 %vm450_vm0, %v449_v0  ;;  %v432_v6 = vld [vmem:[%s559_s3 + $0x18] sm:$0xff]   ;;  %v434_v8 = vld [vmem:[%s559_s3 + $0x28] sm:$0xff]  }
   0x3   :  { %381 = vmatpush3.bf16.msra.mxu0 %v428_v1  ;;  %v429_v3 = vld [vmem:[%s559_s3] sm:$0xff]   ;;  %v435_v9 = vld [vmem:[%s559_s3 + $0x30] sm:$0xff]   ;;  %v436_v10 = vld [vmem:[%s559_s3 + $0x38] sm:$0xff]  }
   0x4   :  { %406 = vmatprep.subr.bf16.mxu0 %v449_v0  ;;  %387 = vmatpush3.bf16.msra.mxu1 %v429_v3  ;;  %v433_v7 = vld [vmem:[%s559_s3 + $0x20] sm:$0xff]   ;;  %v438_v17 = vld [vmem:[%s560_s5 + $0x8] sm:$0xff]   ;;  %v439_v18 = vld [vmem:[%s560_s5 + $0x10] sm:$0xff]  }
   0x5   :  { %388 = vmatprep.subr.bf16.mxu1 %v449_v0  ;;  %v437_v16 = vld [vmem:[%s560_s5] sm:$0xff]   ;;  %v440_v19 = vld [vmem:[%s560_s5 + $0x18] sm:$0xff]   ;;  %v442_v21 = vld [vmem:[%s560_s5 + $0x28] sm:$0xff]  }
   0x6   :  { %383 = vmatmul.mubr.msk.bf16.vlgmr.msra.gmra.mrb[0].mxu0 %vm42_vm1, %v33_v2  ;;  %v441_v20 = vld [vmem:[%s560_s5 + $0x20] sm:$0xff]   ;;  %v443_v22 = vld [vmem:[%s560_s5 + $0x30] sm:$0xff]   ;;  %v444_v23 = vld [vmem:[%s560_s5 + $0x38] sm:$0xff]  }
   0x7   :  { %422 = vmatprep.mubr.msk.bf16.mxu0 %vm450_vm0, %v449_v0  ;;  %407 = vmatpush3.bf16.msra.mxu0 %v437_v16  ;;  %v341_v24 = vld [vmem:[%s561_s4] ss:$0 sm:$0xff] }
   0x8   :  { %389 = vmatpush3.bf16.msra.mxu1 %v430_v4  ;;  %408 = vmatprep.subr.bf16.mxu0 %v449_v0  ;;  %v351_v46 = vld [vmem:[%s562_s6] ss:$0 sm:$0xff] }
   0x9   :  { %390 = vmatprep.subr.bf16.mxu1 %v449_v0  ;;  %v332_v48 = vld [vmem:[%s563_s2] sm:$0xff] }
   0xb   :  { %409 = vmatpush3.bf16.msra.mxu0 %v438_v17 }
   0xc   :  { %391 = vmatpush3.bf16.msra.mxu1 %v431_v5  ;;  %410 = vmatprep.subr.bf16.mxu0 %v449_v0 }
   0xd   :  { %392 = vmatprep.subr.bf16.mxu1 %v449_v0 }
   0xf   :  { %411 = vmatpush3.bf16.msra.mxu0 %v439_v18 }
  0x10   :  { %393 = vmatpush3.bf16.msra.mxu1 %v432_v6  ;;  %412 = vmatprep.subr.bf16.mxu0 %v449_v0 }
  0x11   :  { %394 = vmatprep.subr.bf16.mxu1 %v449_v0 }
  0x13   :  { %413 = vmatpush3.bf16.msra.mxu0 %v440_v19 }
  0x14   :  { %395 = vmatpush3.bf16.msra.mxu1 %v433_v7  ;;  %414 = vmatprep.subr.bf16.mxu0 %v449_v0 }
  0x15   :  { %396 = vmatprep.subr.bf16.mxu1 %v449_v0 }
  0x17   :  { %415 = vmatpush3.bf16.msra.mxu0 %v441_v20 }
  0x18   :  { %397 = vmatpush3.bf16.msra.mxu1 %v434_v8  ;;  %416 = vmatprep.subr.bf16.mxu0 %v449_v0 }
  0x19   :  { %398 = vmatprep.subr.bf16.mxu1 %v449_v0 }
  0x1b   :  { %417 = vmatpush3.bf16.msra.mxu0 %v442_v21 }
  0x1c   :  { %399 = vmatpush3.bf16.msra.mxu1 %v435_v9  ;;  %418 = vmatprep.subr.bf16.mxu0 %v449_v0 }
  0x1d   :  { %400 = vmatprep.subr.bf16.mxu1 %v449_v0 }
  0x1f   :  { %419 = vmatpush3.bf16.msra.mxu0 %v443_v22 }
  0x20   :  { %401 = vmatpush3.bf16.msra.mxu1 %v436_v10  ;;  %420 = vmatprep.subr.bf16.mxu0 %v449_v0 }
  0x23   :  { %421 = vmatpush3.bf16.msra.mxu0 %v444_v23 }
  0xd9   :  { %v80_v11 = vpop.f32.mrb[0].mxu0 }
  0xda   :  { %v92_v12 = vpack.c.bf16 %v80_v11, %v80_v11  ;;  %v384_v13 = vpop.f32.mrb[1].mxu0 }
  0xdb   :  { %v83_v14 = vpop.f32.mrb[2].mxu0 }
  0xdc   :  { %v385_v15 = vpop.f32.mrb[3].mxu0  ;;  %403 = vmatmul.mubr.bf16.vlgmr.msra.gmra.mrb[0].mxu1 %v92_v12 }
 0x1af   :  { %v198_v25 = vpop.f32.mrb[0].mxu1 }
 0x1b0   :  { %v199_v26 = vadd.f32 %v341_v24, %v198_v25  ;;  %v404_v27 = vpop.f32.mrb[1].mxu1 }
 0x1b1   :  { %v201_v28 = vpop.f32.mrb[2].mxu1 }
 0x1b2   :  { %v205_v29 = vand.u32 2147483647, %v199_v26  ;;  %v405_v30 = vpop.f32.mrb[3].mxu1  ;;  %v204_v41 = vmax.f32 %v199_v26, 0.0 }
 0x1b4   :  { %v206_v31 = vsub.f32 0.0, %v205_v29 }
 0x1b6   :  { %v207_v32 = vmul.f32 1.442695, %v206_v31 }
 0x1b8   :  { %445 = vpow2.f32 %v207_v32 }
 0x1c2   :  { %v446_v33 = vpop.eup %445 }
 0x1c3   :  { %v209_v34 = vadd.f32 1.0, %v446_v33  ;;  %v212_v35 = vmul.f32 -0.5, %v446_v33  ;;  %v215_v37 = vand.u32 2147483647, %v446_v33 }
 0x1c5   :  { %447 = vlog2.f32 %v209_v34  ;;  %v213_v36 = vadd.f32 1.0, %v212_v35  ;;  %vm216_vm2 = vcmp.lt.f32.partialorder %v215_v37, 0.0004427343 }
 0x1c7   :  { %v214_v40 = vmul.f32 %v446_v33, %v213_v36 }
 0x1cf   :  { %v448_v38 = vpop.eup %447 }
 0x1d0   :  { %v211_v39 = vmul.f32 0.6931472, %v448_v38 }
 0x1d2   :  { %v217_v42 = vsel %vm216_vm2, %v214_v40, %v211_v39 }
 0x1d3   :  { %v218_v43 = vadd.f32 %v217_v42, %v204_v41 }
 0x1d5   :  { %v350_v44 = vadd.f32 -0.6931472, %v218_v43 }
 0x1d7   :  { %v220_v45 = vpack.c.bf16 %v350_v44, %v350_v44 }
 0x1d9   :  { %423 = vmatmul.mubr.bf16.vlgmr.msra.gmra.mrb[4].mxu0 %v220_v45 }
 0x2ac   :  { %v326_v47 = vpop.f32.mrb[4].mxu0 }
 0x2ad   :  { %v327_v49 = vadd.f32 %v351_v46, %v326_v47  ;;  %v424_v50 = vpop.f32.mrb[5].mxu0 }
 0x2ae   :  { %v329_v51 = vpop.f32.mrb[6].mxu0 }
 0x2af   :  { %v333_v52 = vadd.f32 %v332_v48, %v327_v49  ;;  %v425_v53 = vpop.f32.mrb[7].mxu0 }
 0x2b1   :  { %334 = vst [vmem:[%s564_s7] sm:$0xff] %v333_v52 }

// kernel: nmpeu_forward.13
= control target key start
LH: loop header
LB: loop body
LE: loop exit
PB: predicated region body
PF: predicated region fallthrough
CT: control target
= control target key end

     0   :  { %v1187_v1 = vmov 0.0   ;;  %vm1188_vm0 = vmmov 0   ;;  %s1507_s0 = inlined_call_operand.vmem [shape: bf16[16,128], index: 0, kind: input, shape index: {}]   ;;  %s1508_s1 = inlined_call_operand.vmem [shape: bf16[16,128], index: 1, kind: input, shape index: {}]   ;;  %s1509_s2 = inlined_call_operand.vmem [shape: bf16[16,128], index: 2, kind: input, shape index: {}]   ;;  %s1510_s3 = inlined_call_operand.vmem [shape: bf16[128,128], index: 3, kind: input, shape index: {}]   ;;  %s1511_s4 = inlined_call_operand.vmem [shape: bf16[128,128], index: 4, kind: input, shape index: {}]   ;;  %s1512_s5 = inlined_call_operand.vmem [shape: bf16[128,128], index: 5, kind: input, shape index: {}]   ;;  %s1513_s6 = inlined_call_operand.vmem [shape: f32[1,128], index: 6, kind: input, shape index: {}]   ;;  %s1514_s7 = inlined_call_operand.vmem [shape: bf16[128,128], index: 7, kind: input, shape index: {}]   ;;  %s1515_s8 = inlined_call_operand.vmem [shape: f32[1,128], index: 8, kind: input, shape index: {}]   ;;  %s1516_s9 = inlined_call_operand.vmem [shape: bf16[128,128], index: 9, kind: input, shape index: {}]   ;;  %s1517_s10 = inlined_call_operand.vmem [shape: f32[1,128], index: 10, kind: input, shape index: {}]   ;;  %s1518_s11 = inlined_call_operand.vmem [shape: bf16[128,128], index: 11, kind: input, shape index: {}]   ;;  %s1519_s12 = inlined_call_operand.vmem [shape: f32[1,128], index: 12, kind: input, shape index: {}]   ;;  %s1520_s13 = inlined_call_operand.hbm [shape: bf16[16,128], index: 13, kind: output, shape index: {0}]   ;;  %s1521_s14 = inlined_call_operand.vmem [shape: bf16[16,128], index: 14, kind: output, shape index: {1}]  }
   0x1   :  { %v1096_v0 = vld [vmem:[%s1511_s4] sm:$0xff]   ;;  %971 = vmatprep.subr.bf16.mxu0 %v1187_v1  ;;  %991 = vmatprep.subr.bf16.mxu1 %v1187_v1  ;;  %v1098_v3 = vld [vmem:[%s1511_s4 + $0x8] sm:$0xff]   ;;  %v1100_v5 = vld [vmem:[%s1511_s4 + $0x10] sm:$0xff]  }
   0x2   :  { %v1097_v2 = vld [vmem:[%s1510_s3] sm:$0xff]   ;;  %972 = vmatpush3.bf16.msra.mxu0 %v1096_v0  ;;  %987 = vmatprep.mubr.msk.bf16.mxu0 %vm1188_vm0, %v1187_v1  ;;  %v1099_v4 = vld [vmem:[%s1510_s3 + $0x8] sm:$0xff]   ;;  %v1101_v6 = vld [vmem:[%s1510_s3 + $0x10] sm:$0xff]  }
   0x3   :  { %992 = vmatpush3.bf16.msra.mxu1 %v1097_v2  ;;  %973 = vmatprep.subr.bf16.mxu0 %v1187_v1  ;;  %v1102_v7 = vld [vmem:[%s1511_s4 + $0x18] sm:$0xff]   ;;  %v1104_v9 = vld [vmem:[%s1511_s4 + $0x20] sm:$0xff]   ;;  %v1106_v11 = vld [vmem:[%s1511_s4 + $0x28] sm:$0xff]  }
   0x4   :  { %993 = vmatprep.subr.bf16.mxu1 %v1187_v1  ;;  %1007 = vmatprep.mubr.msk.bf16.mxu1 %vm1188_vm0, %v1187_v1  ;;  %v1103_v8 = vld [vmem:[%s1510_s3 + $0x18] sm:$0xff]   ;;  %v1105_v10 = vld [vmem:[%s1510_s3 + $0x20] sm:$0xff]   ;;  %v1107_v12 = vld [vmem:[%s1510_s3 + $0x28] sm:$0xff]  }
   0x5   :  { %v1108_v13 = vld [vmem:[%s1511_s4 + $0x30] sm:$0xff]   ;;  %v1110_v15 = vld [vmem:[%s1511_s4 + $0x38] sm:$0xff]   ;;  %v1112_v17 = vld [vmem:[%s1508_s1] sm:$0xff]  }
   0x6   :  { %974 = vmatpush3.bf16.msra.mxu0 %v1098_v3  ;;  %v1109_v14 = vld [vmem:[%s1510_s3 + $0x30] sm:$0xff]   ;;  %v1111_v16 = vld [vmem:[%s1510_s3 + $0x38] sm:$0xff]   ;;  %v1113_v18 = vld [vmem:[%s1507_s0] sm:$0xff]  }
   0x7   :  { %994 = vmatpush3.bf16.msra.mxu1 %v1099_v4  ;;  %975 = vmatprep.subr.bf16.mxu0 %v1187_v1  ;;  %v1114_v19 = vld [vmem:[%s1512_s5] sm:$0xff]   ;;  %v1115_v20 = vld [vmem:[%s1512_s5 + $0x8] sm:$0xff]   ;;  %v1116_v21 = vld [vmem:[%s1512_s5 + $0x10] sm:$0xff]  }
   0x8   :  { %995 = vmatprep.subr.bf16.mxu1 %v1187_v1  ;;  %v1117_v22 = vld [vmem:[%s1512_s5 + $0x18] sm:$0xff]  }
   0xa   :  { %976 = vmatpush3.bf16.msra.mxu0 %v1100_v5 }
   0xb   :  { %996 = vmatpush3.bf16.msra.mxu1 %v1101_v6  ;;  %977 = vmatprep.subr.bf16.mxu0 %v1187_v1 }
   0xc   :  { %997 = vmatprep.subr.bf16.mxu1 %v1187_v1 }
   0xe   :  { %978 = vmatpush3.bf16.msra.mxu0 %v1102_v7 }
   0xf   :  { %998 = vmatpush3.bf16.msra.mxu1 %v1103_v8  ;;  %979 = vmatprep.subr.bf16.mxu0 %v1187_v1 }
  0x10   :  { %999 = vmatprep.subr.bf16.mxu1 %v1187_v1 }
  0x12   :  { %980 = vmatpush3.bf16.msra.mxu0 %v1104_v9 }
  0x13   :  { %1000 = vmatpush3.bf16.msra.mxu1 %v1105_v10  ;;  %981 = vmatprep.subr.bf16.mxu0 %v1187_v1 }
  0x14   :  { %1001 = vmatprep.subr.bf16.mxu1 %v1187_v1 }
  0x16   :  { %982 = vmatpush3.bf16.msra.mxu0 %v1106_v11 }
  0x17   :  { %1002 = vmatpush3.bf16.msra.mxu1 %v1107_v12  ;;  %983 = vmatprep.subr.bf16.mxu0 %v1187_v1 }
  0x18   :  { %1003 = vmatprep.subr.bf16.mxu1 %v1187_v1 }
  0x1a   :  { %984 = vmatpush3.bf16.msra.mxu0 %v1108_v13 }
  0x1b   :  { %1004 = vmatpush3.bf16.msra.mxu1 %v1109_v14  ;;  %985 = vmatprep.subr.bf16.mxu0 %v1187_v1 }
  0x1c   :  { %1005 = vmatprep.subr.bf16.mxu1 %v1187_v1 }
  0x1e   :  { %986 = vmatpush3.bf16.msra.mxu0 %v1110_v15 }
  0x1f   :  { %1006 = vmatpush3.bf16.msra.mxu1 %v1111_v16  ;;  %1011 = vmatprep.subr.bf16.mxu0 %v1187_v1 }
  0x20   :  { %1031 = vmatprep.subr.bf16.mxu1 %v1187_v1 }
  0x21   :  { %988 = vmatmul.mubr.bf16.vlgmr.msra.gmra.mrb[0].mxu0 %v1112_v17 }
  0x22   :  { %1008 = vmatmul.mubr.bf16.vlgmr.msra.gmra.mrb[0].mxu1 %v1113_v18  ;;  %1012 = vmatpush3.bf16.msra.mxu0 %v1114_v19 }
  0x23   :  { %1013 = vmatprep.subr.bf16.mxu0 %v1187_v1  ;;  %1027 = vmatprep.mubr.msk.bf16.mxu0 %vm1188_vm0, %v1187_v1 }
  0x24   :  { %1047 = vmatprep.mubr.msk.bf16.mxu1 %vm1188_vm0, %v1187_v1 }
  0x26   :  { %1014 = vmatpush3.bf16.msra.mxu0 %v1115_v20 }
  0x27   :  { %1015 = vmatprep.subr.bf16.mxu0 %v1187_v1 }
  0x2a   :  { %1016 = vmatpush3.bf16.msra.mxu0 %v1116_v21 }
  0x2b   :  { %1017 = vmatprep.subr.bf16.mxu0 %v1187_v1 }
  0x2c   :  { %20 = vsyncpa [#allocation3], 0  ;;  %v1118_v23 = vld [vmem:[%s1512_s5 + $0x20] sm:$0xff]   ;;  %v1119_v24 = vld [vmem:[%s1512_s5 + $0x28] sm:$0xff]  }
  0x2d   :  { %v1120_v25 = vld [vmem:[%s1512_s5 + $0x30] sm:$0xff]   ;;  %v1121_v26 = vld [vmem:[%s1512_s5 + $0x38] sm:$0xff]   ;;  %v1122_v27 = vld [vmem:[%s1509_s2] sm:$0xff]  }
  0x2e   :  { %1018 = vmatpush3.bf16.msra.mxu0 %v1117_v22  ;;  %v1123_v28 = vld [vmem:[%s1514_s7] sm:$0xff]   ;;  %v1124_v29 = vld [vmem:[%s1514_s7 + $0x8] sm:$0xff]   ;;  %v1125_v30 = vld [vmem:[%s1514_s7 + $0x10] sm:$0xff]  }
  0x2f   :  { %1019 = vmatprep.subr.bf16.mxu0 %v1187_v1  ;;  %1032 = vmatpush3.bf16.msra.mxu1 %v1123_v28  ;;  %v1126_v31 = vld [vmem:[%s1514_s7 + $0x18] sm:$0xff]   ;;  %v1127_v32 = vld [vmem:[%s1514_s7 + $0x20] sm:$0xff]   ;;  %v1128_v33 = vld [vmem:[%s1514_s7 + $0x28] sm:$0xff]  }
  0x30   :  { %1033 = vmatprep.subr.bf16.mxu1 %v1187_v1  ;;  %v1129_v34 = vld [vmem:[%s1514_s7 + $0x30] sm:$0xff]   ;;  %v1130_v35 = vld [vmem:[%s1514_s7 + $0x38] sm:$0xff]   ;;  %v1131_v36 = vld [vmem:[%s1516_s9] sm:$0xff]  }
  0x31   :  { %v1132_v37 = vld [vmem:[%s1516_s9 + $0x8] sm:$0xff]   ;;  %v1133_v38 = vld [vmem:[%s1516_s9 + $0x10] sm:$0xff]   ;;  %v1134_v39 = vld [vmem:[%s1516_s9 + $0x18] sm:$0xff]  }
  0x32   :  { %1020 = vmatpush3.bf16.msra.mxu0 %v1118_v23  ;;  %v1135_v40 = vld [vmem:[%s1516_s9 + $0x20] sm:$0xff]   ;;  %v1136_v41 = vld [vmem:[%s1516_s9 + $0x28] sm:$0xff]  }
  0x33   :  { %1021 = vmatprep.subr.bf16.mxu0 %v1187_v1  ;;  %1034 = vmatpush3.bf16.msra.mxu1 %v1124_v29  ;;  %v867_v53 = vld [vmem:[%s1513_s6] ss:$0 sm:$0xff]  ;;  %v1137_v29 = vld [vmem:[%s1516_s9 + $0x30] sm:$0xff]  }
  0x34   :  { %1035 = vmatprep.subr.bf16.mxu1 %v1187_v1 }
  0x36   :  { %1022 = vmatpush3.bf16.msra.mxu0 %v1119_v24 }
  0x37   :  { %1023 = vmatprep.subr.bf16.mxu0 %v1187_v1  ;;  %1036 = vmatpush3.bf16.msra.mxu1 %v1125_v30  ;;  %v1138_v30 = vld [vmem:[%s1516_s9 + $0x38] sm:$0xff]  }
  0x38   :  { %1037 = vmatprep.subr.bf16.mxu1 %v1187_v1 }
  0x3a   :  { %1024 = vmatpush3.bf16.msra.mxu0 %v1120_v25 }
  0x3b   :  { %1025 = vmatprep.subr.bf16.mxu0 %v1187_v1  ;;  %1038 = vmatpush3.bf16.msra.mxu1 %v1126_v31  ;;  %v870_v31 = vld [vmem:[%s1515_s8] ss:$0 sm:$0xff] }
  0x3c   :  { %1039 = vmatprep.subr.bf16.mxu1 %v1187_v1 }
  0x3e   :  { %1026 = vmatpush3.bf16.msra.mxu0 %v1121_v26 }
  0x3f   :  { %1051 = vmatprep.subr.bf16.mxu0 %v1187_v1  ;;  %1040 = vmatpush3.bf16.msra.mxu1 %v1127_v32 }
  0x40   :  { %1041 = vmatprep.subr.bf16.mxu1 %v1187_v1 }
  0x41   :  { %1028 = vmatmul.mubr.bf16.vlgmr.msra.gmra.mrb[4].mxu0 %v1122_v27 }
  0x42   :  { %1067 = vmatprep.mubr.msk.bf16.mxu0 %vm1188_vm0, %v1187_v1  ;;  %1052 = vmatpush3.bf16.msra.mxu0 %v1131_v36 }
  0x43   :  { %1042 = vmatpush3.bf16.msra.mxu1 %v1128_v33  ;;  %1053 = vmatprep.subr.bf16.mxu0 %v1187_v1 }
  0x44   :  { %1043 = vmatprep.subr.bf16.mxu1 %v1187_v1 }
  0x46   :  { %1054 = vmatpush3.bf16.msra.mxu0 %v1132_v37 }
  0x47   :  { %1044 = vmatpush3.bf16.msra.mxu1 %v1129_v34  ;;  %1055 = vmatprep.subr.bf16.mxu0 %v1187_v1 }
  0x48   :  { %1045 = vmatprep.subr.bf16.mxu1 %v1187_v1 }
  0x4a   :  { %1056 = vmatpush3.bf16.msra.mxu0 %v1133_v38 }
  0x4b   :  { %1046 = vmatpush3.bf16.msra.mxu1 %v1130_v35  ;;  %1057 = vmatprep.subr.bf16.mxu0 %v1187_v1 }
  0x4c   :  { %1071 = vmatprep.subr.bf16.mxu1 %v1187_v1 }
  0x4e   :  { %1058 = vmatpush3.bf16.msra.mxu0 %v1134_v39  ;;  %v1139_v39 = vld [vmem:[%s1518_s11] sm:$0xff]  }
  0x4f   :  { %1059 = vmatprep.subr.bf16.mxu0 %v1187_v1 }
  0x52   :  { %1060 = vmatpush3.bf16.msra.mxu0 %v1135_v40  ;;  %v1140_v40 = vld [vmem:[%s1518_s11 + $0x8] sm:$0xff]  }
  0x53   :  { %1061 = vmatprep.subr.bf16.mxu0 %v1187_v1 }
  0x56   :  { %1062 = vmatpush3.bf16.msra.mxu0 %v1136_v41  ;;  %v1141_v41 = vld [vmem:[%s1518_s11 + $0x10] sm:$0xff]  }
  0x57   :  { %1063 = vmatprep.subr.bf16.mxu0 %v1187_v1 }
  0x5a   :  { %1064 = vmatpush3.bf16.msra.mxu0 %v1137_v29 }
  0x5b   :  { %1065 = vmatprep.subr.bf16.mxu0 %v1187_v1 }
  0x5e   :  { %1066 = vmatpush3.bf16.msra.mxu0 %v1138_v30 }
  0xf4   :  { %v172_v42 = vpop.f32.mrb[0].mxu0 }
  0xf5   :  { %v267_v43 = vpop.f32.mrb[0].mxu1  ;;  %v989_v44 = vpop.f32.mrb[1].mxu0 }
  0xf6   :  { %v268_v45 = vadd.f32 %v267_v43, %v172_v42  ;;  %v1009_v46 = vpop.f32.mrb[1].mxu1  ;;  %v175_v47 = vpop.f32.mrb[2].mxu0  ;;  %v1142_v42 = vld [vmem:[%s1518_s11 + $0x18] sm:$0xff]   ;;  %v1143_v43 = vld [vmem:[%s1518_s11 + $0x20] sm:$0xff]   ;;  %v1144_v44 = vld [vmem:[%s1518_s11 + $0x28] sm:$0xff]  }
  0xf7   :  { %v270_v48 = vpop.f32.mrb[2].mxu1  ;;  %v990_v49 = vpop.f32.mrb[3].mxu0  ;;  %v1146_v46 = vld [vmem:[%s1518_s11 + $0x38] sm:$0xff]  }
  0xf8   :  { %v271_v50 = vadd.f32 %v270_v48, %v175_v47  ;;  %v1010_v51 = vpop.f32.mrb[3].mxu1  ;;  %v881_v47 = vld [vmem:[%s1517_s10] ss:$0 sm:$0xff]  ;;  %s1189_s10 = smov [#allocation2]  }
 0x114   :  { %v380_v52 = vpop.f32.mrb[4].mxu0 }
 0x115   :  { %v387_v54 = vadd.f32 %v380_v52, %v268_v45  ;;  %v1029_v55 = vpop.f32.mrb[5].mxu0  ;;  %v1145_v45 = vld [vmem:[%s1518_s11 + $0x30] sm:$0xff]   ;;  %s825_s11 = sshll.u32 %s1189_s10, 4  ;;  %s826_s11 = int_to_ptr.vmem [resolvable:$true] %s825_s11 }
 0x116   :  { %v383_v56 = vpop.f32.mrb[6].mxu0  ;;  %s1163_s4 = scalar_lea.vmem %s826_s11, 128  ;;  %p1168_p1 = scmp.lt.s32.totalorder %s826_s11, %s826_s11 }
 0x117   :  { %v396_v57 = vadd.f32 %v867_v53, %v387_v54  ;;  %v388_v58 = vadd.f32 %v383_v56, %v271_v50  ;;  %v1030_v59 = vpop.f32.mrb[7].mxu0  ;;  %p1164_p0 = scmp.ne.s32.totalorder %s826_s11, %s1163_s4  ;;  %p1169_p2 = scmp.lt.s32.totalorder %s1163_s4, %s1163_s4 }
 0x119   :  { %v400_v60 = vand.u32 2147483647, %v396_v57  ;;  %v397_v61 = vadd.f32 %v867_v53, %v388_v58  ;;  %v398_v18 = vmax.f32 %v396_v57, 0.0  ;;  %p1170_p3 = por %p1169_p2, %p1168_p1 }
 0x11b   :  { %v402_v62 = vsub.f32 0.0, %v400_v60  ;;  %v401_v63 = vand.u32 2147483647, %v397_v61  ;;  %v399_v23 = vmax.f32 %v397_v61, 0.0  ;;  %p1171_p4 = pnand %p1170_p3, %p1164_p0 }
 0x11d   :  { %v404_v0 = vmul.f32 1.442695, %v402_v62  ;;  %v403_v2 = vsub.f32 0.0, %v401_v63 }
 0x11f   :  { %1147 = vpow2.f32 %v404_v0  ;;  %v406_v3 = vmul.f32 1.442695, %v403_v2 }
 0x121   :  { %1149 = vpow2.f32 %v406_v3 }
 0x129   :  { %v1148_v4 = vpop.eup %1147 }
 0x12a   :  { %v408_v5 = vadd.f32 1.0, %v1148_v4  ;;  %v411_v8 = vmul.f32 -0.5, %v1148_v4  ;;  %v414_v11 = vand.u32 2147483647, %v1148_v4 }
 0x12b   :  { %v1150_v6 = vpop.eup %1149 }
 0x12c   :  { %1151 = vlog2.f32 %v408_v5  ;;  %v417_v7 = vadd.f32 1.0, %v1150_v6  ;;  %v420_v9 = vmul.f32 -0.5, %v1150_v6  ;;  %v412_v10 = vadd.f32 1.0, %v411_v8 }
 0x12d   :  { %v423_v14 = vand.u32 2147483647, %v1150_v6  ;;  %vm415_vm1 = vcmp.lt.f32.partialorder %v414_v11, 0.0004427343 }
 0x12e   :  { %1153 = vlog2.f32 %v417_v7  ;;  %v421_v12 = vadd.f32 1.0, %v420_v9  ;;  %v413_v16 = vmul.f32 %v1148_v4, %v412_v10 }
 0x12f   :  { %vm424_vm2 = vcmp.lt.f32.partialorder %v423_v14, 0.0004427343 }
 0x130   :  { %v422_v21 = vmul.f32 %v1150_v6, %v421_v12 }
 0x136   :  { %v1152_v13 = vpop.eup %1151 }
 0x137   :  { %v410_v15 = vmul.f32 0.6931472, %v1152_v13 }
 0x138   :  { %v1154_v17 = vpop.eup %1153 }
 0x139   :  { %v416_v19 = vsel %vm415_vm1, %v413_v16, %v410_v15  ;;  %v419_v20 = vmul.f32 0.6931472, %v1154_v17 }
 0x13a   :  { %v426_v22 = vadd.f32 %v416_v19, %v398_v18 }
 0x13b   :  { %v425_v24 = vsel %vm424_vm2, %v422_v21, %v419_v20 }
 0x13c   :  { %v427_v25 = vadd.f32 %v425_v24, %v399_v23  ;;  %v868_v26 = vadd.f32 -0.6931472, %v426_v22 }
 0x13e   :  { %v869_v27 = vadd.f32 -0.6931472, %v427_v25 }
 0x140   :  { %v430_v28 = vpack.c.bf16 %v869_v27, %v868_v26 }
 0x142   :  { %1048 = vmatmul.mubr.bf16.vlgmr.msra.gmra.mrb[4].mxu1 %v430_v28 }
 0x143   :  { %1087 = vmatprep.mubr.msk.bf16.mxu1 %vm1188_vm0, %v1187_v1  ;;  %1072 = vmatpush3.bf16.msra.mxu1 %v1139_v39 }
 0x144   :  { %1073 = vmatprep.subr.bf16.mxu1 %v1187_v1 }
 0x147   :  { %1074 = vmatpush3.bf16.msra.mxu1 %v1140_v40 }
 0x148   :  { %1075 = vmatprep.subr.bf16.mxu1 %v1187_v1 }
 0x14b   :  { %1076 = vmatpush3.bf16.msra.mxu1 %v1141_v41 }
 0x14c   :  { %1077 = vmatprep.subr.bf16.mxu1 %v1187_v1 }
 0x14f   :  { %1078 = vmatpush3.bf16.msra.mxu1 %v1142_v42 }
 0x150   :  { %1079 = vmatprep.subr.bf16.mxu1 %v1187_v1 }
 0x153   :  { %1080 = vmatpush3.bf16.msra.mxu1 %v1143_v43 }
 0x154   :  { %1081 = vmatprep.subr.bf16.mxu1 %v1187_v1 }
 0x157   :  { %1082 = vmatpush3.bf16.msra.mxu1 %v1144_v44 }
 0x158   :  { %1083 = vmatprep.subr.bf16.mxu1 %v1187_v1 }
 0x15b   :  { %1084 = vmatpush3.bf16.msra.mxu1 %v1145_v45 }
 0x15c   :  { %1085 = vmatprep.subr.bf16.mxu1 %v1187_v1 }
 0x15f   :  { %1086 = vmatpush3.bf16.msra.mxu1 %v1146_v46 }
 0x215   :  { %v536_v32 = vpop.f32.mrb[4].mxu1 }
 0x216   :  { %v1049_v33 = vpop.f32.mrb[5].mxu1  ;;  %v537_v35 = vadd.f32 %v870_v31, %v536_v32 }
 0x217   :  { %v539_v34 = vpop.f32.mrb[6].mxu1 }
 0x218   :  { %v540_v36 = vadd.f32 %v870_v31, %v539_v34  ;;  %v1050_v37 = vpop.f32.mrb[7].mxu1 }
 0x21a   :  { %v543_v38 = vpack.c.bf16 %v540_v36, %v537_v35 }
 0x21c   :  { %911 = vst [vmem:[#allocation2] sm:$0xff] %v543_v38   ;;  %1068 = vmatmul.mubr.bf16.vlgmr.msra.gmra.mrb[8].mxu0 %v543_v38 }
 0x2ef   :  { %v658_v48 = vpop.f32.mrb[8].mxu0 }
 0x2f0   :  { %v659_v49 = vadd.f32 %v881_v47, %v658_v48  ;;  %v1069_v50 = vpop.f32.mrb[9].mxu0 }
 0x2f1   :  { %v661_v51 = vpop.f32.mrb[10].mxu0 }
 0x2f2   :  { %v667_v52 = vand.u32 2147483647, %v659_v49  ;;  %v662_v53 = vadd.f32 %v881_v47, %v661_v51  ;;  %v1070_v54 = vpop.f32.mrb[11].mxu0  ;;  %v665_v10 = vmax.f32 %v659_v49, 0.0 }
 0x2f4   :  { %v669_v55 = vsub.f32 0.0, %v667_v52  ;;  %v668_v56 = vand.u32 2147483647, %v662_v53  ;;  %v666_v15 = vmax.f32 %v662_v53, 0.0 }
 0x2f6   :  { %v671_v57 = vmul.f32 1.442695, %v669_v55  ;;  %v670_v1 = vsub.f32 0.0, %v668_v56 }
 0x2f8   :  { %1155 = vpow2.f32 %v671_v57  ;;  %v673_v58 = vmul.f32 1.442695, %v670_v1 }
 0x2fa   :  { %1157 = vpow2.f32 %v673_v58 }
 0x302   :  { %v1156_v59 = vpop.eup %1155 }
 0x303   :  { %v675_v60 = vadd.f32 1.0, %v1156_v59  ;;  %v678_v63 = vmul.f32 -0.5, %v1156_v59  ;;  %v681_v3 = vand.u32 2147483647, %v1156_v59 }
 0x304   :  { %v1158_v61 = vpop.eup %1157 }
 0x305   :  { %1159 = vlog2.f32 %v675_v60  ;;  %v684_v62 = vadd.f32 1.0, %v1158_v61  ;;  %v687_v0 = vmul.f32 -0.5, %v1158_v61  ;;  %v679_v2 = vadd.f32 1.0, %v678_v63 }
 0x306   :  { %v690_v6 = vand.u32 2147483647, %v1158_v61  ;;  %vm682_vm3 = vcmp.lt.f32.partialorder %v681_v3, 0.0004427343 }
 0x307   :  { %1161 = vlog2.f32 %v684_v62  ;;  %v688_v4 = vadd.f32 1.0, %v687_v0  ;;  %v680_v8 = vmul.f32 %v1156_v59, %v679_v2 }
 0x308   :  { %vm691_vm4 = vcmp.lt.f32.partialorder %v690_v6, 0.0004427343 }
 0x309   :  { %v689_v13 = vmul.f32 %v1158_v61, %v688_v4 }
 0x30f   :  { %v1160_v5 = vpop.eup %1159 }
 0x310   :  { %v677_v7 = vmul.f32 0.6931472, %v1160_v5 }
 0x311   :  { %v1162_v9 = vpop.eup %1161 }
 0x312   :  { %v683_v11 = vsel %vm682_vm3, %v680_v8, %v677_v7  ;;  %v686_v12 = vmul.f32 0.6931472, %v1162_v9 }
 0x313   :  { %v693_v14 = vadd.f32 %v683_v11, %v665_v10 }
 0x314   :  { %v692_v16 = vsel %vm691_vm4, %v689_v13, %v686_v12 }
 0x315   :  { %v694_v17 = vadd.f32 %v692_v16, %v666_v15  ;;  %v890_v18 = vadd.f32 -0.6931472, %v693_v14 }
 0x317   :  { %v891_v19 = vadd.f32 -0.6931472, %v694_v17 }
 0x319   :  { %v697_v20 = vpack.c.bf16 %v891_v19, %v890_v18 }
 0x31b   :  { %1088 = vmatmul.mubr.bf16.vlgmr.msra.gmra.mrb[8].mxu1 %v697_v20 }
 0x31c   :  { %1174 = shalt.err (!%p1171_p4)
}
 0x31d   :  { %s1175_s18 = scalar_lea.hbm %s1520_s13, 128 }
 0x31e   :  { %p1176_p5 = scmp.ne.s32.totalorder %s1520_s13, %s1175_s18  ;;  %p1179_p6 = scmp.lt.u32.totalorder %s1175_s18, %s1520_s13 }
 0x320   :  { %p1181_p7 = pnand %p1179_p6, %p1176_p5 }
 0x322   :  { %1184 = shalt.err (!%p1181_p7)
}
 0x323   :  { %s1190_s21 = smov 64   ;;  %s1191_s22 = smov 4   ;;  %v892_v21 = vld [vmem:[%s1519_s12] ss:$0 sm:$0xff] }
 0x324   :  { %831 = dma.vmem_to_hbm [thread:$0]  %s826_s11, 128, %s1520_s13, [#allocation3], %s1190_s21, %s1190_s21, %s1191_s22  }
 0x3ee   :  { %v803_v22 = vpop.f32.mrb[8].mxu1 }
 0x3ef   :  { %v1089_v23 = vpop.f32.mrb[9].mxu1  ;;  %v804_v25 = vadd.f32 %v892_v21, %v803_v22 }
 0x3f0   :  { %v806_v24 = vpop.f32.mrb[10].mxu1 }
 0x3f1   :  { %v807_v26 = vadd.f32 %v892_v21, %v806_v24  ;;  %v1090_v27 = vpop.f32.mrb[11].mxu1 }
 0x3f3   :  { %v915_v28 = vpack.c.bf16 %v807_v26, %v804_v25 }
 0x3f5   :  { %916 = vst [vmem:[%s1521_s14] sm:$0xff] %v915_v28  }
 0x3f6   :  { %1185 = dma.done.wait [#allocation3], 128  }
 0x3f7   :  { %1186 = vsyncadd [#allocation3], 4294967168 }
 0x3f8   :  { %839 = vsyncpa [#allocation3], 1 }

// kernel: nmpeu_forward.9
= control target key start
LH: loop header
LB: loop body
LE: loop exit
PB: predicated region body
PF: predicated region fallthrough
CT: control target
= control target key end

     0   :  { %v1147_v0 = vmov 0.0   ;;  %vm1148_vm0 = vmmov 0   ;;  %s1455_s4 = inlined_call_operand.vmem [shape: bf16[128,128], index: 4, kind: input, shape index: {}]   ;;  %s1456_s3 = inlined_call_operand.vmem [shape: bf16[128,128], index: 3, kind: input, shape index: {}]   ;;  %s1457_s1 = inlined_call_operand.vmem [shape: bf16[16,128], index: 1, kind: input, shape index: {}]   ;;  %s1458_s0 = inlined_call_operand.vmem [shape: bf16[16,128], index: 0, kind: input, shape index: {}]   ;;  %s1459_s5 = inlined_call_operand.vmem [shape: bf16[128,128], index: 5, kind: input, shape index: {}]   ;;  %s1460_s2 = inlined_call_operand.vmem [shape: bf16[16,128], index: 2, kind: input, shape index: {}]   ;;  %s1461_s7 = inlined_call_operand.vmem [shape: bf16[128,128], index: 7, kind: input, shape index: {}]   ;;  %s1462_s9 = inlined_call_operand.vmem [shape: bf16[128,128], index: 9, kind: input, shape index: {}]   ;;  %s1463_s6 = inlined_call_operand.vmem [shape: f32[1,128], index: 6, kind: input, shape index: {}]   ;;  %s1464_s8 = inlined_call_operand.vmem [shape: f32[1,128], index: 8, kind: input, shape index: {}]   ;;  %s1465_s13 = inlined_call_operand.vmem [shape: bf16[16,128], index: 13, kind: output, shape index: {0}]   ;;  %s1466_s11 = inlined_call_operand.vmem [shape: bf16[128,128], index: 11, kind: input, shape index: {}]   ;;  %s1467_s10 = inlined_call_operand.vmem [shape: f32[1,128], index: 10, kind: input, shape index: {}]   ;;  %s1468_s12 = inlined_call_operand.vmem [shape: f32[1,128], index: 12, kind: input, shape index: {}]   ;;  %s1469_s14 = inlined_call_operand.vmem [shape: bf16[16,128], index: 14, kind: output, shape index: {1}]  }
   0x1   :  { %958 = vmatprep.subr.bf16.mxu0 %v1147_v0  ;;  %978 = vmatprep.subr.bf16.mxu1 %v1147_v0  ;;  %v1080_v1 = vld [vmem:[%s1455_s4] sm:$0xff]   ;;  %v1082_v3 = vld [vmem:[%s1455_s4 + $0x8] sm:$0xff]   ;;  %v1084_v5 = vld [vmem:[%s1455_s4 + $0x10] sm:$0xff]  }
   0x2   :  { %v1081_v2 = vld [vmem:[%s1456_s3] sm:$0xff]   ;;  %974 = vmatprep.mubr.msk.bf16.mxu0 %vm1148_vm0, %v1147_v0  ;;  %994 = vmatprep.mubr.msk.bf16.mxu1 %vm1148_vm0, %v1147_v0  ;;  %v1083_v4 = vld [vmem:[%s1456_s3 + $0x8] sm:$0xff]   ;;  %v1085_v6 = vld [vmem:[%s1456_s3 + $0x10] sm:$0xff]  }
   0x3   :  { %959 = vmatpush3.bf16.msra.mxu0 %v1080_v1  ;;  %979 = vmatpush3.bf16.msra.mxu1 %v1081_v2  ;;  %v1086_v7 = vld [vmem:[%s1455_s4 + $0x18] sm:$0xff]   ;;  %v1088_v9 = vld [vmem:[%s1455_s4 + $0x20] sm:$0xff]   ;;  %v1090_v11 = vld [vmem:[%s1455_s4 + $0x28] sm:$0xff]  }
   0x4   :  { %960 = vmatprep.subr.bf16.mxu0 %v1147_v0  ;;  %980 = vmatprep.subr.bf16.mxu1 %v1147_v0  ;;  %v1087_v8 = vld [vmem:[%s1456_s3 + $0x18] sm:$0xff]   ;;  %v1089_v10 = vld [vmem:[%s1456_s3 + $0x20] sm:$0xff]   ;;  %v1091_v12 = vld [vmem:[%s1456_s3 + $0x28] sm:$0xff]  }
   0x5   :  { %v1092_v13 = vld [vmem:[%s1455_s4 + $0x30] sm:$0xff]   ;;  %v1094_v15 = vld [vmem:[%s1455_s4 + $0x38] sm:$0xff]   ;;  %v1096_v17 = vld [vmem:[%s1457_s1] sm:$0xff]  }
   0x6   :  { %v1093_v14 = vld [vmem:[%s1456_s3 + $0x30] sm:$0xff]   ;;  %v1095_v16 = vld [vmem:[%s1456_s3 + $0x38] sm:$0xff]   ;;  %v1097_v18 = vld [vmem:[%s1458_s0] sm:$0xff]  }
   0x7   :  { %961 = vmatpush3.bf16.msra.mxu0 %v1082_v3  ;;  %981 = vmatpush3.bf16.msra.mxu1 %v1083_v4  ;;  %v1098_v19 = vld [vmem:[%s1459_s5] sm:$0xff]   ;;  %v1099_v20 = vld [vmem:[%s1459_s5 + $0x8] sm:$0xff]   ;;  %v1100_v21 = vld [vmem:[%s1459_s5 + $0x10] sm:$0xff]  }
   0x8   :  { %962 = vmatprep.subr.bf16.mxu0 %v1147_v0  ;;  %982 = vmatprep.subr.bf16.mxu1 %v1147_v0  ;;  %v1101_v22 = vld [vmem:[%s1459_s5 + $0x18] sm:$0xff]   ;;  %v1102_v23 = vld [vmem:[%s1459_s5 + $0x20] sm:$0xff]   ;;  %v1103_v24 = vld [vmem:[%s1459_s5 + $0x28] sm:$0xff]  }
   0x9   :  { %v1104_v25 = vld [vmem:[%s1459_s5 + $0x30] sm:$0xff]   ;;  %v1105_v26 = vld [vmem:[%s1459_s5 + $0x38] sm:$0xff]   ;;  %v1106_v27 = vld [vmem:[%s1460_s2] sm:$0xff]  }
   0xa   :  { %v1107_v28 = vld [vmem:[%s1461_s7] sm:$0xff]   ;;  %v1108_v29 = vld [vmem:[%s1461_s7 + $0x8] sm:$0xff]   ;;  %v1109_v30 = vld [vmem:[%s1461_s7 + $0x10] sm:$0xff]  }
   0xb   :  { %963 = vmatpush3.bf16.msra.mxu0 %v1084_v5  ;;  %983 = vmatpush3.bf16.msra.mxu1 %v1085_v6  ;;  %v1110_v31 = vld [vmem:[%s1461_s7 + $0x18] sm:$0xff]   ;;  %v1111_v32 = vld [vmem:[%s1461_s7 + $0x20] sm:$0xff]   ;;  %v1112_v33 = vld [vmem:[%s1461_s7 + $0x28] sm:$0xff]  }
   0xc   :  { %964 = vmatprep.subr.bf16.mxu0 %v1147_v0  ;;  %984 = vmatprep.subr.bf16.mxu1 %v1147_v0  ;;  %v1113_v34 = vld [vmem:[%s1461_s7 + $0x30] sm:$0xff]   ;;  %v1114_v35 = vld [vmem:[%s1461_s7 + $0x38] sm:$0xff]   ;;  %v1115_v36 = vld [vmem:[%s1462_s9] sm:$0xff]  }
   0xd   :  { %v1116_v37 = vld [vmem:[%s1462_s9 + $0x8] sm:$0xff]   ;;  %v1117_v38 = vld [vmem:[%s1462_s9 + $0x10] sm:$0xff]   ;;  %v1118_v39 = vld [vmem:[%s1462_s9 + $0x18] sm:$0xff]  }
   0xe   :  { %v1119_v40 = vld [vmem:[%s1462_s9 + $0x20] sm:$0xff]   ;;  %v1120_v41 = vld [vmem:[%s1462_s9 + $0x28] sm:$0xff]  }
   0xf   :  { %965 = vmatpush3.bf16.msra.mxu0 %v1086_v7  ;;  %985 = vmatpush3.bf16.msra.mxu1 %v1087_v8  ;;  %v854_v53 = vld [vmem:[%s1463_s6] ss:$0 sm:$0xff] }
  0x10   :  { %966 = vmatprep.subr.bf16.mxu0 %v1147_v0  ;;  %986 = vmatprep.subr.bf16.mxu1 %v1147_v0 }
  0x13   :  { %967 = vmatpush3.bf16.msra.mxu0 %v1088_v9  ;;  %987 = vmatpush3.bf16.msra.mxu1 %v1089_v10 }
  0x14   :  { %968 = vmatprep.subr.bf16.mxu0 %v1147_v0  ;;  %988 = vmatprep.subr.bf16.mxu1 %v1147_v0 }
  0x17   :  { %969 = vmatpush3.bf16.msra.mxu0 %v1090_v11  ;;  %989 = vmatpush3.bf16.msra.mxu1 %v1091_v12 }
  0x18   :  { %970 = vmatprep.subr.bf16.mxu0 %v1147_v0  ;;  %990 = vmatprep.subr.bf16.mxu1 %v1147_v0 }
  0x1b   :  { %971 = vmatpush3.bf16.msra.mxu0 %v1092_v13  ;;  %991 = vmatpush3.bf16.msra.mxu1 %v1093_v14 }
  0x1c   :  { %972 = vmatprep.subr.bf16.mxu0 %v1147_v0  ;;  %992 = vmatprep.subr.bf16.mxu1 %v1147_v0 }
  0x1f   :  { %973 = vmatpush3.bf16.msra.mxu0 %v1094_v15  ;;  %993 = vmatpush3.bf16.msra.mxu1 %v1095_v16 }
  0x20   :  { %998 = vmatprep.subr.bf16.mxu0 %v1147_v0  ;;  %1018 = vmatprep.subr.bf16.mxu1 %v1147_v0 }
  0x22   :  { %975 = vmatmul.mubr.bf16.vlgmr.msra.gmra.mrb[0].mxu0 %v1096_v17  ;;  %995 = vmatmul.mubr.bf16.vlgmr.msra.gmra.mrb[0].mxu1 %v1097_v18 }
  0x23   :  { %999 = vmatpush3.bf16.msra.mxu0 %v1098_v19  ;;  %1014 = vmatprep.mubr.msk.bf16.mxu0 %vm1148_vm0, %v1147_v0 }
  0x24   :  { %1000 = vmatprep.subr.bf16.mxu0 %v1147_v0  ;;  %1034 = vmatprep.mubr.msk.bf16.mxu1 %vm1148_vm0, %v1147_v0 }
  0x25   :  { %1019 = vmatpush3.bf16.msra.mxu1 %v1107_v28 }
  0x26   :  { %1020 = vmatprep.subr.bf16.mxu1 %v1147_v0 }
  0x27   :  { %1001 = vmatpush3.bf16.msra.mxu0 %v1099_v20 }
  0x28   :  { %1002 = vmatprep.subr.bf16.mxu0 %v1147_v0 }
  0x29   :  { %1021 = vmatpush3.bf16.msra.mxu1 %v1108_v29  ;;  %v1121_v29 = vld [vmem:[%s1462_s9 + $0x30] sm:$0xff]  }
  0x2a   :  { %1022 = vmatprep.subr.bf16.mxu1 %v1147_v0 }
  0x2b   :  { %1003 = vmatpush3.bf16.msra.mxu0 %v1100_v21 }
  0x2c   :  { %1004 = vmatprep.subr.bf16.mxu0 %v1147_v0 }
  0x2d   :  { %1023 = vmatpush3.bf16.msra.mxu1 %v1109_v30  ;;  %v1122_v30 = vld [vmem:[%s1462_s9 + $0x38] sm:$0xff]  }
  0x2e   :  { %1024 = vmatprep.subr.bf16.mxu1 %v1147_v0 }
  0x2f   :  { %1005 = vmatpush3.bf16.msra.mxu0 %v1101_v22 }
  0x30   :  { %1006 = vmatprep.subr.bf16.mxu0 %v1147_v0 }
  0x31   :  { %1025 = vmatpush3.bf16.msra.mxu1 %v1110_v31  ;;  %v857_v31 = vld [vmem:[%s1464_s8] ss:$0 sm:$0xff] }
  0x32   :  { %1026 = vmatprep.subr.bf16.mxu1 %v1147_v0 }
  0x33   :  { %1007 = vmatpush3.bf16.msra.mxu0 %v1102_v23 }
  0x34   :  { %1008 = vmatprep.subr.bf16.mxu0 %v1147_v0 }
  0x35   :  { %1027 = vmatpush3.bf16.msra.mxu1 %v1111_v32 }
  0x36   :  { %1028 = vmatprep.subr.bf16.mxu1 %v1147_v0 }
  0x37   :  { %1009 = vmatpush3.bf16.msra.mxu0 %v1103_v24 }
  0x38   :  { %1010 = vmatprep.subr.bf16.mxu0 %v1147_v0 }
  0x39   :  { %1029 = vmatpush3.bf16.msra.mxu1 %v1112_v33 }
  0x3a   :  { %1030 = vmatprep.subr.bf16.mxu1 %v1147_v0 }
  0x3b   :  { %1011 = vmatpush3.bf16.msra.mxu0 %v1104_v25 }
  0x3c   :  { %1012 = vmatprep.subr.bf16.mxu0 %v1147_v0 }
  0x3d   :  { %1031 = vmatpush3.bf16.msra.mxu1 %v1113_v34 }
  0x3e   :  { %1032 = vmatprep.subr.bf16.mxu1 %v1147_v0 }
  0x3f   :  { %1013 = vmatpush3.bf16.msra.mxu0 %v1105_v26 }
  0x40   :  { %1038 = vmatprep.subr.bf16.mxu0 %v1147_v0 }
  0x41   :  { %1033 = vmatpush3.bf16.msra.mxu1 %v1114_v35 }
  0x42   :  { %1015 = vmatmul.mubr.bf16.vlgmr.msra.gmra.mrb[4].mxu0 %v1106_v27  ;;  %1058 = vmatprep.subr.bf16.mxu1 %v1147_v0 }
  0x43   :  { %1054 = vmatprep.mubr.msk.bf16.mxu0 %vm1148_vm0, %v1147_v0  ;;  %1039 = vmatpush3.bf16.msra.mxu0 %v1115_v36 }
  0x44   :  { %1040 = vmatprep.subr.bf16.mxu0 %v1147_v0 }
  0x47   :  { %1041 = vmatpush3.bf16.msra.mxu0 %v1116_v37 }
  0x48   :  { %1042 = vmatprep.subr.bf16.mxu0 %v1147_v0 }
  0x4b   :  { %1043 = vmatpush3.bf16.msra.mxu0 %v1117_v38 }
  0x4c   :  { %1044 = vmatprep.subr.bf16.mxu0 %v1147_v0 }
  0x4f   :  { %1045 = vmatpush3.bf16.msra.mxu0 %v1118_v39  ;;  %v1123_v39 = vld [vmem:[%s1466_s11] sm:$0xff]  }
  0x50   :  { %1046 = vmatprep.subr.bf16.mxu0 %v1147_v0 }
  0x53   :  { %1047 = vmatpush3.bf16.msra.mxu0 %v1119_v40  ;;  %v1124_v40 = vld [vmem:[%s1466_s11 + $0x8] sm:$0xff]  }
  0x54   :  { %1048 = vmatprep.subr.bf16.mxu0 %v1147_v0 }
  0x57   :  { %1049 = vmatpush3.bf16.msra.mxu0 %v1120_v41  ;;  %v1125_v41 = vld [vmem:[%s1466_s11 + $0x10] sm:$0xff]  }
  0x58   :  { %1050 = vmatprep.subr.bf16.mxu0 %v1147_v0 }
  0x5b   :  { %1051 = vmatpush3.bf16.msra.mxu0 %v1121_v29 }
  0x5c   :  { %1052 = vmatprep.subr.bf16.mxu0 %v1147_v0 }
  0x5f   :  { %1053 = vmatpush3.bf16.msra.mxu0 %v1122_v30 }
  0xf5   :  { %v171_v42 = vpop.f32.mrb[0].mxu0  ;;  %v266_v43 = vpop.f32.mrb[0].mxu1 }
  0xf6   :  { %v976_v44 = vpop.f32.mrb[1].mxu0  ;;  %v267_v45 = vadd.f32 %v266_v43, %v171_v42  ;;  %v996_v46 = vpop.f32.mrb[1].mxu1  ;;  %v1126_v42 = vld [vmem:[%s1466_s11 + $0x18] sm:$0xff]   ;;  %v1127_v43 = vld [vmem:[%s1466_s11 + $0x20] sm:$0xff]  }
  0xf7   :  { %v174_v47 = vpop.f32.mrb[2].mxu0  ;;  %v269_v48 = vpop.f32.mrb[2].mxu1  ;;  %v1128_v44 = vld [vmem:[%s1466_s11 + $0x28] sm:$0xff]   ;;  %v1130_v46 = vld [vmem:[%s1466_s11 + $0x38] sm:$0xff]  }
  0xf8   :  { %v977_v49 = vpop.f32.mrb[3].mxu0  ;;  %v270_v50 = vadd.f32 %v269_v48, %v174_v47  ;;  %v997_v51 = vpop.f32.mrb[3].mxu1  ;;  %v868_v47 = vld [vmem:[%s1467_s10] ss:$0 sm:$0xff] }
 0x115   :  { %v379_v52 = vpop.f32.mrb[4].mxu0 }
 0x116   :  { %v386_v54 = vadd.f32 %v379_v52, %v267_v45  ;;  %v1016_v55 = vpop.f32.mrb[5].mxu0  ;;  %v1129_v45 = vld [vmem:[%s1466_s11 + $0x30] sm:$0xff]  }
 0x117   :  { %v382_v56 = vpop.f32.mrb[6].mxu0 }
 0x118   :  { %v395_v57 = vadd.f32 %v854_v53, %v386_v54  ;;  %v387_v58 = vadd.f32 %v382_v56, %v270_v50  ;;  %v1017_v59 = vpop.f32.mrb[7].mxu0 }
 0x11a   :  { %v399_v60 = vand.u32 2147483647, %v395_v57  ;;  %v396_v61 = vadd.f32 %v854_v53, %v387_v58  ;;  %v397_v18 = vmax.f32 %v395_v57, 0.0 }
 0x11c   :  { %v401_v62 = vsub.f32 0.0, %v399_v60  ;;  %v400_v63 = vand.u32 2147483647, %v396_v61  ;;  %v398_v23 = vmax.f32 %v396_v61, 0.0 }
 0x11e   :  { %v403_v1 = vmul.f32 1.442695, %v401_v62  ;;  %v402_v2 = vsub.f32 0.0, %v400_v63 }
 0x120   :  { %1131 = vpow2.f32 %v403_v1  ;;  %v405_v3 = vmul.f32 1.442695, %v402_v2 }
 0x122   :  { %1133 = vpow2.f32 %v405_v3 }
 0x12a   :  { %v1132_v4 = vpop.eup %1131 }
 0x12b   :  { %v407_v5 = vadd.f32 1.0, %v1132_v4  ;;  %v410_v8 = vmul.f32 -0.5, %v1132_v4  ;;  %v413_v11 = vand.u32 2147483647, %v1132_v4 }
 0x12c   :  { %v1134_v6 = vpop.eup %1133 }
 0x12d   :  { %1135 = vlog2.f32 %v407_v5  ;;  %v416_v7 = vadd.f32 1.0, %v1134_v6  ;;  %v419_v9 = vmul.f32 -0.5, %v1134_v6  ;;  %v411_v10 = vadd.f32 1.0, %v410_v8 }
 0x12e   :  { %v422_v14 = vand.u32 2147483647, %v1134_v6  ;;  %vm414_vm1 = vcmp.lt.f32.partialorder %v413_v11, 0.0004427343 }
 0x12f   :  { %1137 = vlog2.f32 %v416_v7  ;;  %v420_v12 = vadd.f32 1.0, %v419_v9  ;;  %v412_v16 = vmul.f32 %v1132_v4, %v411_v10 }
 0x130   :  { %vm423_vm2 = vcmp.lt.f32.partialorder %v422_v14, 0.0004427343 }
 0x131   :  { %v421_v21 = vmul.f32 %v1134_v6, %v420_v12 }
 0x137   :  { %v1136_v13 = vpop.eup %1135 }
 0x138   :  { %v409_v15 = vmul.f32 0.6931472, %v1136_v13 }
 0x139   :  { %v1138_v17 = vpop.eup %1137 }
 0x13a   :  { %v415_v19 = vsel %vm414_vm1, %v412_v16, %v409_v15  ;;  %v418_v20 = vmul.f32 0.6931472, %v1138_v17 }
 0x13b   :  { %v425_v22 = vadd.f32 %v415_v19, %v397_v18 }
 0x13c   :  { %v424_v24 = vsel %vm423_vm2, %v421_v21, %v418_v20  ;;  %v879_v21 = vld [vmem:[%s1468_s12] ss:$0 sm:$0xff] }
 0x13d   :  { %v426_v25 = vadd.f32 %v424_v24, %v398_v23  ;;  %v855_v26 = vadd.f32 -0.6931472, %v425_v22 }
 0x13f   :  { %v856_v27 = vadd.f32 -0.6931472, %v426_v25 }
 0x141   :  { %v429_v28 = vpack.c.bf16 %v856_v27, %v855_v26 }
 0x143   :  { %1035 = vmatmul.mubr.bf16.vlgmr.msra.gmra.mrb[4].mxu1 %v429_v28 }
 0x144   :  { %1074 = vmatprep.mubr.msk.bf16.mxu1 %vm1148_vm0, %v1147_v0  ;;  %1059 = vmatpush3.bf16.msra.mxu1 %v1123_v39 }
 0x145   :  { %1060 = vmatprep.subr.bf16.mxu1 %v1147_v0 }
 0x148   :  { %1061 = vmatpush3.bf16.msra.mxu1 %v1124_v40 }
 0x149   :  { %1062 = vmatprep.subr.bf16.mxu1 %v1147_v0 }
 0x14c   :  { %1063 = vmatpush3.bf16.msra.mxu1 %v1125_v41 }
 0x14d   :  { %1064 = vmatprep.subr.bf16.mxu1 %v1147_v0 }
 0x150   :  { %1065 = vmatpush3.bf16.msra.mxu1 %v1126_v42 }
 0x151   :  { %1066 = vmatprep.subr.bf16.mxu1 %v1147_v0 }
 0x154   :  { %1067 = vmatpush3.bf16.msra.mxu1 %v1127_v43 }
 0x155   :  { %1068 = vmatprep.subr.bf16.mxu1 %v1147_v0 }
 0x158   :  { %1069 = vmatpush3.bf16.msra.mxu1 %v1128_v44 }
 0x159   :  { %1070 = vmatprep.subr.bf16.mxu1 %v1147_v0 }
 0x15c   :  { %1071 = vmatpush3.bf16.msra.mxu1 %v1129_v45 }
 0x15d   :  { %1072 = vmatprep.subr.bf16.mxu1 %v1147_v0 }
 0x160   :  { %1073 = vmatpush3.bf16.msra.mxu1 %v1130_v46 }
 0x216   :  { %v535_v32 = vpop.f32.mrb[4].mxu1 }
 0x217   :  { %v1036_v33 = vpop.f32.mrb[5].mxu1  ;;  %v536_v35 = vadd.f32 %v857_v31, %v535_v32 }
 0x218   :  { %v538_v34 = vpop.f32.mrb[6].mxu1 }
 0x219   :  { %v539_v36 = vadd.f32 %v857_v31, %v538_v34  ;;  %v1037_v37 = vpop.f32.mrb[7].mxu1 }
 0x21b   :  { %v542_v38 = vpack.c.bf16 %v539_v36, %v536_v35 }
 0x21d   :  { %898 = vst [vmem:[%s1465_s13] sm:$0xff] %v542_v38   ;;  %1055 = vmatmul.mubr.bf16.vlgmr.msra.gmra.mrb[8].mxu0 %v542_v38 }
 0x2f0   :  { %v657_v48 = vpop.f32.mrb[8].mxu0 }
 0x2f1   :  { %v658_v49 = vadd.f32 %v868_v47, %v657_v48  ;;  %v1056_v50 = vpop.f32.mrb[9].mxu0 }
 0x2f2   :  { %v660_v51 = vpop.f32.mrb[10].mxu0 }
 0x2f3   :  { %v666_v52 = vand.u32 2147483647, %v658_v49  ;;  %v661_v53 = vadd.f32 %v868_v47, %v660_v51  ;;  %v1057_v54 = vpop.f32.mrb[11].mxu0  ;;  %v664_v10 = vmax.f32 %v658_v49, 0.0 }
 0x2f5   :  { %v668_v55 = vsub.f32 0.0, %v666_v52  ;;  %v667_v56 = vand.u32 2147483647, %v661_v53  ;;  %v665_v15 = vmax.f32 %v661_v53, 0.0 }
 0x2f7   :  { %v670_v57 = vmul.f32 1.442695, %v668_v55  ;;  %v669_v0 = vsub.f32 0.0, %v667_v56 }
 0x2f9   :  { %1139 = vpow2.f32 %v670_v57  ;;  %v672_v58 = vmul.f32 1.442695, %v669_v0 }
 0x2fb   :  { %1141 = vpow2.f32 %v672_v58 }
 0x303   :  { %v1140_v59 = vpop.eup %1139 }
 0x304   :  { %v674_v60 = vadd.f32 1.0, %v1140_v59  ;;  %v677_v63 = vmul.f32 -0.5, %v1140_v59  ;;  %v680_v3 = vand.u32 2147483647, %v1140_v59 }
 0x305   :  { %v1142_v61 = vpop.eup %1141 }
 0x306   :  { %1143 = vlog2.f32 %v674_v60  ;;  %v683_v62 = vadd.f32 1.0, %v1142_v61  ;;  %v686_v1 = vmul.f32 -0.5, %v1142_v61  ;;  %v678_v2 = vadd.f32 1.0, %v677_v63 }
 0x307   :  { %v689_v6 = vand.u32 2147483647, %v1142_v61  ;;  %vm681_vm3 = vcmp.lt.f32.partialorder %v680_v3, 0.0004427343 }
 0x308   :  { %1145 = vlog2.f32 %v683_v62  ;;  %v687_v4 = vadd.f32 1.0, %v686_v1  ;;  %v679_v8 = vmul.f32 %v1140_v59, %v678_v2 }
 0x309   :  { %vm690_vm4 = vcmp.lt.f32.partialorder %v689_v6, 0.0004427343 }
 0x30a   :  { %v688_v13 = vmul.f32 %v1142_v61, %v687_v4 }
 0x310   :  { %v1144_v5 = vpop.eup %1143 }
 0x311   :  { %v676_v7 = vmul.f32 0.6931472, %v1144_v5 }
 0x312   :  { %v1146_v9 = vpop.eup %1145 }
 0x313   :  { %v682_v11 = vsel %vm681_vm3, %v679_v8, %v676_v7  ;;  %v685_v12 = vmul.f32 0.6931472, %v1146_v9 }
 0x314   :  { %v692_v14 = vadd.f32 %v682_v11, %v664_v10 }
 0x315   :  { %v691_v16 = vsel %vm690_vm4, %v688_v13, %v685_v12 }
 0x316   :  { %v693_v17 = vadd.f32 %v691_v16, %v665_v15  ;;  %v877_v18 = vadd.f32 -0.6931472, %v692_v14 }
 0x318   :  { %v878_v19 = vadd.f32 -0.6931472, %v693_v17 }
 0x31a   :  { %v696_v20 = vpack.c.bf16 %v878_v19, %v877_v18 }
 0x31c   :  { %1075 = vmatmul.mubr.bf16.vlgmr.msra.gmra.mrb[8].mxu1 %v696_v20 }
 0x3ef   :  { %v802_v22 = vpop.f32.mrb[8].mxu1 }
 0x3f0   :  { %v1076_v23 = vpop.f32.mrb[9].mxu1  ;;  %v803_v25 = vadd.f32 %v879_v21, %v802_v22 }
 0x3f1   :  { %v805_v24 = vpop.f32.mrb[10].mxu1 }
 0x3f2   :  { %v806_v26 = vadd.f32 %v879_v21, %v805_v24  ;;  %v1077_v27 = vpop.f32.mrb[11].mxu1 }
 0x3f4   :  { %v902_v28 = vpack.c.bf16 %v806_v26, %v803_v25 }
 0x3f6   :  { %903 = vst [vmem:[%s1469_s14] sm:$0xff] %v902_v28  }

// kernel: nmpeu_forward.15
= control target key start
LH: loop header
LB: loop body
LE: loop exit
PB: predicated region body
PF: predicated region fallthrough
CT: control target
= control target key end

     0   :  { %v420_v1 = vmov 0.0   ;;  %vm421_vm0 = vmmov 0   ;;  %s531_s0 = inlined_call_operand.vmem [shape: f32[8,128], index: 0, kind: input, shape index: {}]   ;;  %s532_s1 = inlined_call_operand.vmem [shape: bf16[128,128], index: 1, kind: input, shape index: {}]   ;;  %s533_s2 = inlined_call_operand.vmem [shape: f32[1,128], index: 2, kind: input, shape index: {}]   ;;  %s534_s3 = inlined_call_operand.vmem [shape: bf16[128,128], index: 3, kind: input, shape index: {}]   ;;  %s535_s4 = inlined_call_operand.vmem [shape: f32[1,128], index: 4, kind: input, shape index: {}]   ;;  %s536_s5 = inlined_call_operand.vmem [shape: f32[8,1], index: 5, kind: input, shape index: {}]   ;;  %s537_s6 = inlined_call_operand.hbm [shape: f32[1,128], index: 6, kind: output, shape index: {}]  }
   0x1   :  { %v376_v0 = vld [vmem:[%s532_s1] sm:$0xff]   ;;  %331 = vmatprep.subr.bf16.mxu0 %v420_v1  ;;  %351 = vmatprep.subr.bf16.mxu1 %v420_v1  ;;  %v377_v2 = vld [vmem:[%s532_s1 + $0x8] sm:$0xff]   ;;  %v378_v3 = vld [vmem:[%s532_s1 + $0x10] sm:$0xff]  }
   0x2   :  { %332 = vmatpush3.bf16.msra.mxu0 %v376_v0  ;;  %347 = vmatprep.mubr.msk.bf16.mxu0 %vm421_vm0, %v420_v1  ;;  %v379_v4 = vld [vmem:[%s532_s1 + $0x18] sm:$0xff]   ;;  %v380_v5 = vld [vmem:[%s532_s1 + $0x20] sm:$0xff]  }
   0x3   :  { %333 = vmatprep.subr.bf16.mxu0 %v420_v1  ;;  %367 = vmatprep.mubr.msk.bf16.mxu1 %vm421_vm0, %v420_v1 }
   0x6   :  { %334 = vmatpush3.bf16.msra.mxu0 %v377_v2 }
   0x7   :  { %335 = vmatprep.subr.bf16.mxu0 %v420_v1 }
   0xa   :  { %336 = vmatpush3.bf16.msra.mxu0 %v378_v3 }
   0xb   :  { %337 = vmatprep.subr.bf16.mxu0 %v420_v1 }
   0xe   :  { %338 = vmatpush3.bf16.msra.mxu0 %v379_v4 }
   0xf   :  { %11 = vsyncpa [#allocation3], 0  ;;  %339 = vmatprep.subr.bf16.mxu0 %v420_v1  ;;  %v381_v6 = vld [vmem:[%s532_s1 + $0x28] sm:$0xff]   ;;  %v382_v7 = vld [vmem:[%s532_s1 + $0x30] sm:$0xff]   ;;  %v422_v20 = vmov 0  }
  0x10   :  { %v383_v8 = vld [vmem:[%s532_s1 + $0x38] sm:$0xff]   ;;  %v25_v9 = vld [vmem:[%s531_s0] sm:$0xff]  ;;  %v385_v12 = vld [vmem:[%s534_s3 + $0x8] sm:$0xff]   ;;  %375 = vset.pattern.permute.xlu0 %v422_v20 }
  0x11   :  { %v26_v10 = vpack.c.bf16 %v25_v9, %v25_v9  ;;  %v384_v11 = vld [vmem:[%s534_s3] sm:$0xff]   ;;  %v386_v13 = vld [vmem:[%s534_s3 + $0x10] sm:$0xff]   ;;  %v387_v14 = vld [vmem:[%s534_s3 + $0x18] sm:$0xff]  }
  0x12   :  { %340 = vmatpush3.bf16.msra.mxu0 %v380_v5  ;;  %352 = vmatpush3.bf16.msra.mxu1 %v384_v11  ;;  %v388_v15 = vld [vmem:[%s534_s3 + $0x20] sm:$0xff]   ;;  %v389_v16 = vld [vmem:[%s534_s3 + $0x28] sm:$0xff]   ;;  %v390_v17 = vld [vmem:[%s534_s3 + $0x30] sm:$0xff]  }
  0x13   :  { %341 = vmatprep.subr.bf16.mxu0 %v420_v1  ;;  %353 = vmatprep.subr.bf16.mxu1 %v420_v1  ;;  %v391_v18 = vld [vmem:[%s534_s3 + $0x38] sm:$0xff]   ;;  %v266_v19 = vld [vmem:[%s536_s5] sm:$0xff]  ;;  %s423_s5 = smov [#allocation2]  }
  0x14   :  { %269 = vperm.xlu0 %375, %v266_v19   ;;  %v294_v21 = vld [vmem:[%s533_s2] ss:$0 sm:$0xff]  ;;  %s286_s9 = sshll.u32 %s423_s5, 4  ;;  %s287_s9 = int_to_ptr.vmem [resolvable:$true] %s286_s9 }
  0x15   :  { %v304_v43 = vld [vmem:[%s535_s4] ss:$0 sm:$0xff]  ;;  %s396_s10 = scalar_lea.vmem %s287_s9, 16  ;;  %s400_s4 = scalar_lea.vmem %s287_s9, 32 }
  0x16   :  { %342 = vmatpush3.bf16.msra.mxu0 %v381_v6  ;;  %354 = vmatpush3.bf16.msra.mxu1 %v385_v12  ;;  %p397_p0 = scmp.ne.s32.totalorder %s287_s9, %s396_s10  ;;  %p401_p1 = scmp.lt.s32.totalorder %s287_s9, %s287_s9 }
  0x17   :  { %343 = vmatprep.subr.bf16.mxu0 %v420_v1  ;;  %355 = vmatprep.subr.bf16.mxu1 %v420_v1  ;;  %p402_p2 = scmp.lt.s32.totalorder %s400_s4, %s396_s10 }
  0x19   :  { %p403_p3 = por %p402_p2, %p401_p1 }
  0x1a   :  { %344 = vmatpush3.bf16.msra.mxu0 %v382_v7  ;;  %356 = vmatpush3.bf16.msra.mxu1 %v386_v13 }
  0x1b   :  { %345 = vmatprep.subr.bf16.mxu0 %v420_v1  ;;  %357 = vmatprep.subr.bf16.mxu1 %v420_v1  ;;  %p404_p4 = pnand %p403_p3, %p397_p0 }
  0x1e   :  { %346 = vmatpush3.bf16.msra.mxu0 %v383_v8  ;;  %358 = vmatpush3.bf16.msra.mxu1 %v387_v14 }
  0x1f   :  { %359 = vmatprep.subr.bf16.mxu1 %v420_v1 }
  0x21   :  { %348 = vmatmul.mubr.bf16.vlgmr.msra.gmra.mrb[0].mxu0 %v26_v10 }
  0x22   :  { %360 = vmatpush3.bf16.msra.mxu1 %v388_v15 }
  0x23   :  { %361 = vmatprep.subr.bf16.mxu1 %v420_v1 }
  0x26   :  { %362 = vmatpush3.bf16.msra.mxu1 %v389_v16 }
  0x27   :  { %363 = vmatprep.subr.bf16.mxu1 %v420_v1 }
  0x2a   :  { %364 = vmatpush3.bf16.msra.mxu1 %v390_v17 }
  0x2b   :  { %365 = vmatprep.subr.bf16.mxu1 %v420_v1 }
  0x2e   :  { %366 = vmatpush3.bf16.msra.mxu1 %v391_v18 }
  0x93   :  { %v270_v45 = vpop.permute.xlu0 %269 }
  0xf4   :  { %v132_v22 = vpop.f32.mrb[0].mxu0 }
  0xf5   :  { %v133_v23 = vadd.f32 %v294_v21, %v132_v22  ;;  %v349_v24 = vpop.f32.mrb[1].mxu0 }
  0xf6   :  { %v135_v25 = vpop.f32.mrb[2].mxu0 }
  0xf7   :  { %v139_v26 = vand.u32 2147483647, %v133_v23  ;;  %v350_v27 = vpop.f32.mrb[3].mxu0  ;;  %v138_v38 = vmax.f32 %v133_v23, 0.0 }
  0xf9   :  { %v140_v28 = vsub.f32 0.0, %v139_v26 }
  0xfb   :  { %v141_v29 = vmul.f32 1.442695, %v140_v28 }
  0xfd   :  { %392 = vpow2.f32 %v141_v29 }
 0x107   :  { %v393_v30 = vpop.eup %392 }
 0x108   :  { %v143_v31 = vadd.f32 1.0, %v393_v30  ;;  %v146_v32 = vmul.f32 -0.5, %v393_v30  ;;  %v149_v34 = vand.u32 2147483647, %v393_v30 }
 0x10a   :  { %394 = vlog2.f32 %v143_v31  ;;  %v147_v33 = vadd.f32 1.0, %v146_v32  ;;  %vm150_vm1 = vcmp.lt.f32.partialorder %v149_v34, 0.0004427343 }
 0x10c   :  { %v148_v37 = vmul.f32 %v393_v30, %v147_v33 }
 0x114   :  { %v395_v35 = vpop.eup %394 }
 0x115   :  { %v145_v36 = vmul.f32 0.6931472, %v395_v35 }
 0x117   :  { %v151_v39 = vsel %vm150_vm1, %v148_v37, %v145_v36 }
 0x118   :  { %v152_v40 = vadd.f32 %v151_v39, %v138_v38 }
 0x11a   :  { %v303_v41 = vadd.f32 -0.6931472, %v152_v40 }
 0x11c   :  { %v154_v42 = vpack.c.bf16 %v303_v41, %v303_v41 }
 0x11e   :  { %368 = vmatmul.mubr.bf16.vlgmr.msra.gmra.mrb[0].mxu1 %v154_v42 }
 0x1f1   :  { %v260_v44 = vpop.f32.mrb[0].mxu1 }
 0x1f2   :  { %v261_v46 = vadd.f32 %v304_v43, %v260_v44  ;;  %v369_v47 = vpop.f32.mrb[1].mxu1 }
 0x1f3   :  { %v263_v48 = vpop.f32.mrb[2].mxu1 }
 0x1f4   :  { %v272_v49 = vmul.f32 %v270_v45, %v261_v46  ;;  %v370_v50 = vpop.f32.mrb[3].mxu1 }
 0x1f6   :  { %v273_v51 = vrot.slane %v272_v49, 4 }
 0x1f8   :  { %v274_v52 = vadd.f32 %v273_v51, %v272_v49 }
 0x1fa   :  { %v275_v53 = vrot.slane %v274_v52, 2 }
 0x1fc   :  { %v276_v54 = vadd.f32 %v275_v53, %v274_v52 }
 0x1fe   :  { %v277_v55 = vrot.slane %v276_v54, 1 }
 0x200   :  { %v278_v56 = vadd.f32 %v277_v55, %v276_v54 }
 0x202   :  { %279 = vst [vmem:[#allocation2] sm:$0x1] %v278_v56 }
 0x203   :  { %407 = shalt.err (!%p404_p4)
}
 0x204   :  { %s408_s13 = scalar_lea.hbm %s537_s6, 16 }
 0x205   :  { %p409_p5 = scmp.ne.s32.totalorder %s537_s6, %s408_s13  ;;  %p412_p6 = scmp.lt.u32.totalorder %s408_s13, %s537_s6 }
 0x207   :  { %p414_p7 = pnand %p412_p6, %p409_p5 }
 0x209   :  { %417 = shalt.err (!%p414_p7)
}
 0x20a   :  { %289 = dma.vmem_to_hbm [thread:$0]  %s287_s9, 16, %s537_s6, [#allocation3]  }
 0x20b   :  { %418 = dma.done.wait [#allocation3], 16  }
 0x20c   :  { %419 = vsyncadd [#allocation3], 4294967280 }
 0x20d   :  { %293 = vsyncpa [#allocation3], 1 }

</bundles_post_ra>
